<compile_context>
chip_gen: v7x
topology: tpu7x:2x2x1
jax: 0.10.0
libtpu: 0.0.40
codegen_flags: <defaults>
</compile_context>

<pallas_src>
import math

import jax
import jax.numpy as jnp
import numpy as np
from jax import lax
from jax.experimental import pallas as pl
from jax.experimental.pallas import tpu as pltpu

# ----------------------------- model config ---------------------------------
LATENT_DIM = 16
EFFECTS_DIM = 8
OUTPUT_DIM = 12
OUTPUT_PAD = 128          # lane-dense padded output width (sliced in wrapper)
HIDDEN_DIM = 32           # d_model
N_HEADS = 4               # HIDDEN_DIM % N_HEADS == 0
N_LAYERS = 2
HEAD_DIM = HIDDEN_DIM // N_HEADS
FF_DIM = HIDDEN_DIM * 4
SEQ = 2                   # [latent token, effects token]
LN_EPS = 1e-5


def _round_up(x, m):
    return (x + m - 1) // m * m


# ------------------------------- kernel -------------------------------------
def _layernorm(v, w, b):
    mu = jnp.mean(v, axis=-1, keepdims=True)
    var = jnp.mean((v - mu) ** 2, axis=-1, keepdims=True)
    return (v - mu) * lax.rsqrt(var + LN_EPS) * w + b


def _make_kernel(tile_b):
    TB = tile_b

    def kernel(
        latent_ref, effects_ref,
        lat_w_ref, lat_b_ref, eff_w_ref, eff_b_ref,
        wq_ref, bq_ref, wk_ref, bk_ref, wv_ref, bv_ref,
        wo_ref, bo_ref, n1w_ref, n1b_ref,
        w1_ref, b1_ref, w2_ref, b2_ref, n2w_ref, n2b_ref,
        hs_ref, he_ref, out_w_ref, out_b_ref,
        o_ref,
    ):
        f32 = jnp.float32

        # --- embeddings; positional encoding pre-folded into the biases ---
        x0 = jnp.dot(latent_ref[...], lat_w_ref[...],
                     preferred_element_type=f32) + lat_b_ref[...]      # (TB, H)
        x1 = jnp.dot(effects_ref[...], eff_w_ref[...],
                     preferred_element_type=f32) + eff_b_ref[...]      # (TB, H)
        # token 0 rows first, token 1 rows second
        x = jnp.concatenate([x0, x1], axis=0)                          # (2TB, H)

        hs = hs_ref[...]   # (H, nh) block-diagonal per-head sum, 1/sqrt(hd) folded
        he = he_ref[...]   # (nh, H) per-head broadcast matrix

        # --- transformer encoder layers (post-norm, ReLU, eval-mode dropout) ---
        for l in range(N_LAYERS):
            q = jnp.dot(x, wq_ref[l], preferred_element_type=f32) + bq_ref[l]
            k = jnp.dot(x, wk_ref[l], preferred_element_type=f32) + bk_ref[l]
            v = jnp.dot(x, wv_ref[l], preferred_element_type=f32) + bv_ref[l]

            dk = k[:TB] - k[TB:]       # (TB, H)  key difference (2-key softmax)
            dv = v[:TB] - v[TB:]       # (TB, H)
            v1 = v[TB:]                # (TB, H)

            # per-head score difference for both query tokens at once
            dk2 = jnp.concatenate([dk, dk], axis=0)                    # (2TB, H)
            d = jnp.dot(q * dk2, hs, preferred_element_type=f32)       # (2TB, nh)
            p = 1.0 / (1.0 + jnp.exp(-d))       # softmax weight of value-token 0
            pa = jnp.dot(p, he, preferred_element_type=f32)            # (2TB, H)

            # attn_out = p*v0 + (1-p)*v1 = v1 + p*(v0-v1)
            a = jnp.concatenate([v1 + pa[:TB] * dv,
                                 v1 + pa[TB:] * dv], axis=0)           # (2TB, H)

            o = jnp.dot(a, wo_ref[l], preferred_element_type=f32) + bo_ref[l]
            x = _layernorm(x + o, n1w_ref[l], n1b_ref[l])

            if l == N_LAYERS - 1:
                # only the effects token (token 1) is read after the last layer
                x = x[TB:]

            f = jnp.maximum(
                jnp.dot(x, w1_ref[l], preferred_element_type=f32) + b1_ref[l],
                0.0)
            f = jnp.dot(f, w2_ref[l], preferred_element_type=f32) + b2_ref[l]
            x = _layernorm(x + f, n2w_ref[l], n2b_ref[l])

        # --- final LayerNorm (affine folded into out weights) + output Linear ---
        mu = jnp.mean(x, axis=-1, keepdims=True)
        var = jnp.mean((x - mu) ** 2, axis=-1, keepdims=True)
        z = (x - mu) * lax.rsqrt(var + LN_EPS)
        o_ref[...] = jnp.dot(z, out_w_ref[...],
                             preferred_element_type=f32) + out_b_ref[...]

    return kernel


# ------------------------------ wrapper --------------------------------------
def _const_spec(shape):
    zeros = (0,) * len(shape)
    return pl.BlockSpec(shape, lambda b, _z=zeros: _z)


def conditional_transformer(latent, effects, params, *, tile_b=None):
    B = latent.shape[0]
    p = params
    H = HIDDEN_DIM

    if tile_b is None:
        tile_b = min(512, _round_up(B, 8))
    tile_b = max(8, _round_up(tile_b, 8))
    b_pad = _round_up(B, tile_b)

    lat = latent.astype(jnp.float32)
    eff = effects.astype(jnp.float32)
    if b_pad != B:
        lat = jnp.pad(lat, ((0, b_pad - B), (0, 0)))
        eff = jnp.pad(eff, ((0, b_pad - B), (0, 0)))

    # --- fold / rearrange params for the kernel ---
    lat_b0 = p["lat_b"] + p["pe"][0:1]          # pos-enc folded into bias
    eff_b1 = p["eff_b"] + p["pe"][1:2]
    wq = p["inp_wT"][:, :, 0:H]
    wk = p["inp_wT"][:, :, H:2 * H]
    wv = p["inp_wT"][:, :, 2 * H:3 * H]
    bq = p["inp_b"][:, :, 0:H]
    bk = p["inp_b"][:, :, H:2 * H]
    bv = p["inp_b"][:, :, 2 * H:3 * H]

    # per-head sum / broadcast matrices; attention scale folded into hs
    mask = (jnp.arange(H)[:, None] // HEAD_DIM
            == jnp.arange(N_HEADS)[None, :]).astype(jnp.float32)   # (H, nh)
    hs = mask * (1.0 / math.sqrt(HEAD_DIM))
    he = mask.T                                                    # (nh, H)

    # final LayerNorm affine folded into the output projection, padded lane-dense
    out_w_f = p["lnf_w"].reshape(H, 1) * p["out_wT"]               # (H, OUT)
    out_b_f = p["lnf_b"] @ p["out_wT"] + p["out_b"]                # (1, OUT)
    out_w = jnp.zeros((H, OUTPUT_PAD), jnp.float32).at[:, :OUTPUT_DIM].set(out_w_f)
    out_b = jnp.zeros((1, OUTPUT_PAD), jnp.float32).at[:, :OUTPUT_DIM].set(out_b_f)

    param_args = [
        p["lat_wT"], lat_b0, p["eff_wT"], eff_b1,
        wq, bq, wk, bk, wv, bv,
        p["op_wT"], p["op_b"], p["n1_w"], p["n1_b"],
        p["l1_wT"], p["l1_b"], p["l2_wT"], p["l2_b"], p["n2_w"], p["n2_b"],
        hs, he, out_w, out_b,
    ]

    in_specs = [
        pl.BlockSpec((tile_b, LATENT_DIM), lambda b: (b, 0)),
        pl.BlockSpec((tile_b, EFFECTS_DIM), lambda b: (b, 0)),
    ] + [_const_spec(a.shape) for a in param_args]

    out = pl.pallas_call(
        _make_kernel(tile_b),
        out_shape=jax.ShapeDtypeStruct((b_pad, OUTPUT_PAD), jnp.float32),
        grid=(b_pad // tile_b,),
        in_specs=in_specs,
        out_specs=pl.BlockSpec((tile_b, OUTPUT_PAD), lambda b: (b, 0)),
        compiler_params=pltpu.CompilerParams(
            dimension_semantics=("parallel",)),
    )(lat, eff, *param_args)
    return out[:B, :OUTPUT_DIM]


# ----------------------- params (deterministic init) -------------------------
def make_positional_encoding(max_len, d_model):
    pos = jnp.arange(max_len, dtype=jnp.float32)[:, None]
    div = jnp.exp(jnp.arange(0, d_model, 2, dtype=jnp.float32)
                  * (-math.log(10000.0) / d_model))
    pe_sin = jnp.sin(pos * div)
    pe_cos = jnp.cos(pos * div)
    pe = jnp.stack([pe_sin, pe_cos], axis=-1).reshape(max_len, d_model)
    return pe


def make_params(key):
    H, L = HIDDEN_DIM, N_LAYERS
    ks = jax.random.split(key, 16)
    nrm = lambda k, s: (0.02 * jax.random.normal(k, s)).astype(jnp.float32)
    zeros = lambda s: jnp.zeros(s, jnp.float32)
    ones = lambda s: jnp.ones(s, jnp.float32)

    return {
        # embeddings (weights pre-transposed: x @ W)
        "lat_wT": nrm(ks[0], (LATENT_DIM, H)),
        "lat_b": zeros((1, H)),
        "eff_wT": nrm(ks[1], (EFFECTS_DIM, H)),
        "eff_b": zeros((1, H)),
        "pe": make_positional_encoding(250, H)[:SEQ],
        # encoder layers, stacked on leading layer dim
        "inp_wT": nrm(ks[2], (L, H, 3 * H)),
        "inp_b": nrm(ks[3], (L, 1, 3 * H)),
        "op_wT": nrm(ks[4], (L, H, H)),
        "op_b": nrm(ks[5], (L, 1, H)),
        "n1_w": ones((L, 1, H)),
        "n1_b": zeros((L, 1, H)),
        "l1_wT": nrm(ks[6], (L, H, FF_DIM)),
        "l1_b": nrm(ks[7], (L, 1, FF_DIM)),
        "l2_wT": nrm(ks[8], (L, FF_DIM, H)),
        "l2_b": nrm(ks[9], (L, 1, H)),
        "n2_w": ones((L, 1, H)),
        "n2_b": zeros((L, 1, H)),
        # output head
        "lnf_w": ones((1, H)),
        "lnf_b": zeros((1, H)),
        "out_wT": nrm(ks[10], (H, OUTPUT_DIM)),
        "out_b": zeros((1, OUTPUT_DIM)),
    }


# ----------------------------- pure-JAX reference ----------------------------
def ref_layernorm(v, w, b):
    mu = jnp.mean(v, axis=-1, keepdims=True)
    var = jnp.mean((v - mu) ** 2, axis=-1, keepdims=True)
    return (v - mu) / jnp.sqrt(var + LN_EPS) * w + b


def reference_forward(latent, effects, p):
    B = latent.shape[0]
    H, nh, hd = HIDDEN_DIM, N_HEADS, HEAD_DIM
    emb_lat = latent @ p["lat_wT"] + p["lat_b"]          # (B, H)
    emb_eff = effects @ p["eff_wT"] + p["eff_b"]         # (B, H)
    x = jnp.stack([emb_lat, emb_eff], axis=1) + p["pe"][None]  # (B, 2, H)
    for l in range(N_LAYERS):
        qkv = x @ p["inp_wT"][l] + p["inp_b"][l]
        q, k, v = jnp.split(qkv, 3, axis=-1)
        qh = q.reshape(B, SEQ, nh, hd)
        kh = k.reshape(B, SEQ, nh, hd)
        vh = v.reshape(B, SEQ, nh, hd)
        s = jnp.einsum("bqhd,bkhd->bhqk", qh, kh) / math.sqrt(hd)
        pr = jax.nn.softmax(s, axis=-1)
        o = jnp.einsum("bhqk,bkhd->bqhd", pr, vh).reshape(B, SEQ, H)
        o = o @ p["op_wT"][l] + p["op_b"][l]
        x = ref_layernorm(x + o, p["n1_w"][l], p["n1_b"][l])
        ff = jnp.maximum(x @ p["l1_wT"][l] + p["l1_b"][l], 0.0)
        ff = ff @ p["l2_wT"][l] + p["l2_b"][l]
        x = ref_layernorm(x + ff, p["n2_w"][l], p["n2_b"][l])
    tok = x[:, -1, :]
    tok = ref_layernorm(tok, p["lnf_w"], p["lnf_b"])
    return tok @ p["out_wT"] + p["out_b"]


# --------------------------------- main --------------------------------------
if __name__ == "__main__":
    key = jax.random.PRNGKey(0)
    k_lat, k_eff, k_par = jax.random.split(key, 3)

    B = 2
    latent = jax.random.normal(k_lat, (B, LATENT_DIM), jnp.float32)
    effects = jax.random.normal(k_eff, (B, EFFECTS_DIM), jnp.float32)
    params = make_params(k_par)

    out = jax.block_until_ready(conditional_transformer(latent, effects, params))
    ref = jax.block_until_ready(reference_forward(latent, effects, params))

    np.testing.assert_allclose(np.asarray(out), np.asarray(ref),
                               rtol=1e-3, atol=1e-3)
    assert out.shape == (B, OUTPUT_DIM)
    print("KERNEL_OK")
</pallas_src>

<mosaic_0001>
module attributes {stable_mosaic.version = 11 : i64} {
  func.func @kernel(%arg0: i32, %arg1: memref<8x16xf32, #tpu.memory_space<vmem>>, %arg2: memref<8x8xf32, #tpu.memory_space<vmem>>, %arg3: memref<16x32xf32, #tpu.memory_space<vmem>>, %arg4: memref<1x32xf32, #tpu.memory_space<vmem>>, %arg5: memref<8x32xf32, #tpu.memory_space<vmem>>, %arg6: memref<1x32xf32, #tpu.memory_space<vmem>>, %arg7: memref<2x32x32xf32, #tpu.memory_space<vmem>>, %arg8: memref<2x1x32xf32, #tpu.memory_space<vmem>>, %arg9: memref<2x32x32xf32, #tpu.memory_space<vmem>>, %arg10: memref<2x1x32xf32, #tpu.memory_space<vmem>>, %arg11: memref<2x32x32xf32, #tpu.memory_space<vmem>>, %arg12: memref<2x1x32xf32, #tpu.memory_space<vmem>>, %arg13: memref<2x32x32xf32, #tpu.memory_space<vmem>>, %arg14: memref<2x1x32xf32, #tpu.memory_space<vmem>>, %arg15: memref<2x1x32xf32, #tpu.memory_space<vmem>>, %arg16: memref<2x1x32xf32, #tpu.memory_space<vmem>>, %arg17: memref<2x32x128xf32, #tpu.memory_space<vmem>>, %arg18: memref<2x1x128xf32, #tpu.memory_space<vmem>>, %arg19: memref<2x128x32xf32, #tpu.memory_space<vmem>>, %arg20: memref<2x1x32xf32, #tpu.memory_space<vmem>>, %arg21: memref<2x1x32xf32, #tpu.memory_space<vmem>>, %arg22: memref<2x1x32xf32, #tpu.memory_space<vmem>>, %arg23: memref<32x4xf32, #tpu.memory_space<vmem>>, %arg24: memref<4x32xf32, #tpu.memory_space<vmem>>, %arg25: memref<32x128xf32, #tpu.memory_space<vmem>>, %arg26: memref<1x128xf32, #tpu.memory_space<vmem>>, %arg27: memref<8x128xf32, #tpu.memory_space<vmem>>) attributes {dimension_semantics = [#tpu.dimension_semantics<parallel>], iteration_bounds = array<i64: 1>, scalar_prefetch = 0 : i64, scratch_operands = 0 : i64, tpu.core_type = #tpu.core_type<tc>, window_params = [{transform_indices = @transform_0, window_bounds = array<i64: 8, 16>}, {transform_indices = @transform_1, window_bounds = array<i64: 8, 8>}, {pipeline_mode = #tpu.pipeline_mode<synchronous>, transform_indices = @transform_2, window_bounds = array<i64: 16, 32>}, {pipeline_mode = #tpu.pipeline_mode<synchronous>, transform_indices = @transform_3, window_bounds = array<i64: 1, 32>}, {pipeline_mode = #tpu.pipeline_mode<synchronous>, transform_indices = @transform_4, window_bounds = array<i64: 8, 32>}, {pipeline_mode = #tpu.pipeline_mode<synchronous>, transform_indices = @transform_5, window_bounds = array<i64: 1, 32>}, {pipeline_mode = #tpu.pipeline_mode<synchronous>, transform_indices = @transform_6, window_bounds = array<i64: 2, 32, 32>}, {pipeline_mode = #tpu.pipeline_mode<synchronous>, transform_indices = @transform_7, window_bounds = array<i64: 2, 1, 32>}, {pipeline_mode = #tpu.pipeline_mode<synchronous>, transform_indices = @transform_8, window_bounds = array<i64: 2, 32, 32>}, {pipeline_mode = #tpu.pipeline_mode<synchronous>, transform_indices = @transform_9, window_bounds = array<i64: 2, 1, 32>}, {pipeline_mode = #tpu.pipeline_mode<synchronous>, transform_indices = @transform_10, window_bounds = array<i64: 2, 32, 32>}, {pipeline_mode = #tpu.pipeline_mode<synchronous>, transform_indices = @transform_11, window_bounds = array<i64: 2, 1, 32>}, {pipeline_mode = #tpu.pipeline_mode<synchronous>, transform_indices = @transform_12, window_bounds = array<i64: 2, 32, 32>}, {pipeline_mode = #tpu.pipeline_mode<synchronous>, transform_indices = @transform_13, window_bounds = array<i64: 2, 1, 32>}, {pipeline_mode = #tpu.pipeline_mode<synchronous>, transform_indices = @transform_14, window_bounds = array<i64: 2, 1, 32>}, {pipeline_mode = #tpu.pipeline_mode<synchronous>, transform_indices = @transform_15, window_bounds = array<i64: 2, 1, 32>}, {pipeline_mode = #tpu.pipeline_mode<synchronous>, transform_indices = @transform_16, window_bounds = array<i64: 2, 32, 128>}, {pipeline_mode = #tpu.pipeline_mode<synchronous>, transform_indices = @transform_17, window_bounds = array<i64: 2, 1, 128>}, {pipeline_mode = #tpu.pipeline_mode<synchronous>, transform_indices = @transform_18, window_bounds = array<i64: 2, 128, 32>}, {pipeline_mode = #tpu.pipeline_mode<synchronous>, transform_indices = @transform_19, window_bounds = array<i64: 2, 1, 32>}, {pipeline_mode = #tpu.pipeline_mode<synchronous>, transform_indices = @transform_20, window_bounds = array<i64: 2, 1, 32>}, {pipeline_mode = #tpu.pipeline_mode<synchronous>, transform_indices = @transform_21, window_bounds = array<i64: 2, 1, 32>}, {pipeline_mode = #tpu.pipeline_mode<synchronous>, transform_indices = @transform_22, window_bounds = array<i64: 32, 4>}, {pipeline_mode = #tpu.pipeline_mode<synchronous>, transform_indices = @transform_23, window_bounds = array<i64: 4, 32>}, {pipeline_mode = #tpu.pipeline_mode<synchronous>, transform_indices = @transform_24, window_bounds = array<i64: 32, 128>}, {pipeline_mode = #tpu.pipeline_mode<synchronous>, transform_indices = @transform_25, window_bounds = array<i64: 1, 128>}, {transform_indices = @transform_26, window_bounds = array<i64: 8, 128>}]} {
    %c0 = arith.constant 0 : index
    %c0_0 = arith.constant 0 : index
    %0 = vector.load %arg1[%c0, %c0_0] : memref<8x16xf32, #tpu.memory_space<vmem>>, vector<8x16xf32>
    %c0_1 = arith.constant 0 : index
    %c0_2 = arith.constant 0 : index
    %1 = vector.load %arg3[%c0_1, %c0_2] : memref<16x32xf32, #tpu.memory_space<vmem>>, vector<16x32xf32>
    %cst = arith.constant dense<0.000000e+00> : vector<8x32xf32>
    %2 = tpu.matmul %0, %1, %cst {dimension_numbers = #tpu.dot_dimension_numbers<[1], [0], [0], [1], [0, 0, 1, 1], [], []>} : vector<8x16xf32>, vector<16x32xf32>, vector<8x32xf32> -> vector<8x32xf32>
    %c0_3 = arith.constant 0 : index
    %c0_4 = arith.constant 0 : index
    %3 = vector.load %arg4[%c0_3, %c0_4] : memref<1x32xf32, #tpu.memory_space<vmem>>, vector<1x32xf32>
    %4 = vector.broadcast %3 : vector<1x32xf32> to vector<8x32xf32>
    %5 = arith.addf %2, %4 : vector<8x32xf32>
    %c0_5 = arith.constant 0 : index
    %c0_6 = arith.constant 0 : index
    %6 = vector.load %arg2[%c0_5, %c0_6] : memref<8x8xf32, #tpu.memory_space<vmem>>, vector<8x8xf32>
    %c0_7 = arith.constant 0 : index
    %c0_8 = arith.constant 0 : index
    %7 = vector.load %arg5[%c0_7, %c0_8] : memref<8x32xf32, #tpu.memory_space<vmem>>, vector<8x32xf32>
    %cst_9 = arith.constant dense<0.000000e+00> : vector<8x32xf32>
    %8 = tpu.matmul %6, %7, %cst_9 {dimension_numbers = #tpu.dot_dimension_numbers<[1], [0], [0], [1], [0, 0, 1, 1], [], []>} : vector<8x8xf32>, vector<8x32xf32>, vector<8x32xf32> -> vector<8x32xf32>
    %c0_10 = arith.constant 0 : index
    %c0_11 = arith.constant 0 : index
    %9 = vector.load %arg6[%c0_10, %c0_11] : memref<1x32xf32, #tpu.memory_space<vmem>>, vector<1x32xf32>
    %10 = vector.broadcast %9 : vector<1x32xf32> to vector<8x32xf32>
    %11 = arith.addf %8, %10 : vector<8x32xf32>
    %12 = tpu.concatenate %5, %11 in 0 : vector<8x32xf32>, vector<8x32xf32> -> vector<16x32xf32>
    %c0_12 = arith.constant 0 : index
    %c0_13 = arith.constant 0 : index
    %13 = vector.load %arg23[%c0_12, %c0_13] : memref<32x4xf32, #tpu.memory_space<vmem>>, vector<32x4xf32>
    %c0_14 = arith.constant 0 : index
    %c0_15 = arith.constant 0 : index
    %14 = vector.load %arg24[%c0_14, %c0_15] : memref<4x32xf32, #tpu.memory_space<vmem>>, vector<4x32xf32>
    %c0_16 = arith.constant 0 : index
    %c0_17 = arith.constant 0 : index
    %c0_18 = arith.constant 0 : index
    %15 = vector.load %arg7[%c0_16, %c0_17, %c0_18] : memref<2x32x32xf32, #tpu.memory_space<vmem>>, vector<1x32x32xf32>
    %16 = vector.shape_cast %15 : vector<1x32x32xf32> to vector<32x32xf32>
    %cst_19 = arith.constant dense<0.000000e+00> : vector<16x32xf32>
    %17 = tpu.matmul %12, %16, %cst_19 {dimension_numbers = #tpu.dot_dimension_numbers<[1], [0], [0], [1], [0, 0, 1, 1], [], []>} : vector<16x32xf32>, vector<32x32xf32>, vector<16x32xf32> -> vector<16x32xf32>
    %c0_20 = arith.constant 0 : index
    %c0_21 = arith.constant 0 : index
    %c0_22 = arith.constant 0 : index
    %18 = vector.load %arg8[%c0_20, %c0_21, %c0_22] : memref<2x1x32xf32, #tpu.memory_space<vmem>>, vector<1x1x32xf32>
    %19 = vector.shape_cast %18 : vector<1x1x32xf32> to vector<1x32xf32>
    %20 = vector.broadcast %19 : vector<1x32xf32> to vector<16x32xf32>
    %21 = arith.addf %17, %20 : vector<16x32xf32>
    %c0_23 = arith.constant 0 : index
    %c0_24 = arith.constant 0 : index
    %c0_25 = arith.constant 0 : index
    %22 = vector.load %arg9[%c0_23, %c0_24, %c0_25] : memref<2x32x32xf32, #tpu.memory_space<vmem>>, vector<1x32x32xf32>
    %23 = vector.shape_cast %22 : vector<1x32x32xf32> to vector<32x32xf32>
    %cst_26 = arith.constant dense<0.000000e+00> : vector<16x32xf32>
    %24 = tpu.matmul %12, %23, %cst_26 {dimension_numbers = #tpu.dot_dimension_numbers<[1], [0], [0], [1], [0, 0, 1, 1], [], []>} : vector<16x32xf32>, vector<32x32xf32>, vector<16x32xf32> -> vector<16x32xf32>
    %c0_27 = arith.constant 0 : index
    %c0_28 = arith.constant 0 : index
    %c0_29 = arith.constant 0 : index
    %25 = vector.load %arg10[%c0_27, %c0_28, %c0_29] : memref<2x1x32xf32, #tpu.memory_space<vmem>>, vector<1x1x32xf32>
    %26 = vector.shape_cast %25 : vector<1x1x32xf32> to vector<1x32xf32>
    %27 = vector.broadcast %26 : vector<1x32xf32> to vector<16x32xf32>
    %28 = arith.addf %24, %27 : vector<16x32xf32>
    %c0_30 = arith.constant 0 : index
    %c0_31 = arith.constant 0 : index
    %c0_32 = arith.constant 0 : index
    %29 = vector.load %arg11[%c0_30, %c0_31, %c0_32] : memref<2x32x32xf32, #tpu.memory_space<vmem>>, vector<1x32x32xf32>
    %30 = vector.shape_cast %29 : vector<1x32x32xf32> to vector<32x32xf32>
    %cst_33 = arith.constant dense<0.000000e+00> : vector<16x32xf32>
    %31 = tpu.matmul %12, %30, %cst_33 {dimension_numbers = #tpu.dot_dimension_numbers<[1], [0], [0], [1], [0, 0, 1, 1], [], []>} : vector<16x32xf32>, vector<32x32xf32>, vector<16x32xf32> -> vector<16x32xf32>
    %c0_34 = arith.constant 0 : index
    %c0_35 = arith.constant 0 : index
    %c0_36 = arith.constant 0 : index
    %32 = vector.load %arg12[%c0_34, %c0_35, %c0_36] : memref<2x1x32xf32, #tpu.memory_space<vmem>>, vector<1x1x32xf32>
    %33 = vector.shape_cast %32 : vector<1x1x32xf32> to vector<1x32xf32>
    %34 = vector.broadcast %33 : vector<1x32xf32> to vector<16x32xf32>
    %35 = arith.addf %31, %34 : vector<16x32xf32>
    %36 = vector.extract_strided_slice %28 {offsets = [0, 0], sizes = [8, 32], strides = [1, 1]} : vector<16x32xf32> to vector<8x32xf32>
    %37 = vector.extract_strided_slice %28 {offsets = [8, 0], sizes = [8, 32], strides = [1, 1]} : vector<16x32xf32> to vector<8x32xf32>
    %38 = arith.subf %36, %37 : vector<8x32xf32>
    %39 = vector.extract_strided_slice %35 {offsets = [0, 0], sizes = [8, 32], strides = [1, 1]} : vector<16x32xf32> to vector<8x32xf32>
    %40 = vector.extract_strided_slice %35 {offsets = [8, 0], sizes = [8, 32], strides = [1, 1]} : vector<16x32xf32> to vector<8x32xf32>
    %41 = arith.subf %39, %40 : vector<8x32xf32>
    %42 = vector.extract_strided_slice %35 {offsets = [8, 0], sizes = [8, 32], strides = [1, 1]} : vector<16x32xf32> to vector<8x32xf32>
    %43 = tpu.concatenate %38, %38 in 0 : vector<8x32xf32>, vector<8x32xf32> -> vector<16x32xf32>
    %44 = arith.mulf %21, %43 : vector<16x32xf32>
    %cst_37 = arith.constant dense<0.000000e+00> : vector<16x4xf32>
    %45 = tpu.matmul %44, %13, %cst_37 {dimension_numbers = #tpu.dot_dimension_numbers<[1], [0], [0], [1], [0, 0, 1, 1], [], []>} : vector<16x32xf32>, vector<32x4xf32>, vector<16x4xf32> -> vector<16x4xf32>
    %cst_38 = arith.constant 0.000000e+00 : f32
    %46 = vector.broadcast %cst_38 : f32 to vector<16x4xf32>
    %47 = arith.subf %46, %45 : vector<16x4xf32>
    %48 = math.exp %47 : vector<16x4xf32>
    %cst_39 = arith.constant 1.000000e+00 : f32
    %49 = vector.broadcast %cst_39 : f32 to vector<16x4xf32>
    %50 = arith.addf %49, %48 : vector<16x4xf32>
    %cst_40 = arith.constant 1.000000e+00 : f32
    %51 = vector.broadcast %cst_40 : f32 to vector<16x4xf32>
    %52 = arith.divf %51, %50 : vector<16x4xf32>
    %cst_41 = arith.constant dense<0.000000e+00> : vector<16x32xf32>
    %53 = tpu.matmul %52, %14, %cst_41 {dimension_numbers = #tpu.dot_dimension_numbers<[1], [0], [0], [1], [0, 0, 1, 1], [], []>} : vector<16x4xf32>, vector<4x32xf32>, vector<16x32xf32> -> vector<16x32xf32>
    %54 = vector.extract_strided_slice %53 {offsets = [0, 0], sizes = [8, 32], strides = [1, 1]} : vector<16x32xf32> to vector<8x32xf32>
    %55 = arith.mulf %54, %41 : vector<8x32xf32>
    %56 = arith.addf %42, %55 : vector<8x32xf32>
    %57 = vector.extract_strided_slice %53 {offsets = [8, 0], sizes = [8, 32], strides = [1, 1]} : vector<16x32xf32> to vector<8x32xf32>
    %58 = arith.mulf %57, %41 : vector<8x32xf32>
    %59 = arith.addf %42, %58 : vector<8x32xf32>
    %60 = tpu.concatenate %56, %59 in 0 : vector<8x32xf32>, vector<8x32xf32> -> vector<16x32xf32>
    %c0_42 = arith.constant 0 : index
    %c0_43 = arith.constant 0 : index
    %c0_44 = arith.constant 0 : index
    %61 = vector.load %arg13[%c0_42, %c0_43, %c0_44] : memref<2x32x32xf32, #tpu.memory_space<vmem>>, vector<1x32x32xf32>
    %62 = vector.shape_cast %61 : vector<1x32x32xf32> to vector<32x32xf32>
    %cst_45 = arith.constant dense<0.000000e+00> : vector<16x32xf32>
    %63 = tpu.matmul %60, %62, %cst_45 {dimension_numbers = #tpu.dot_dimension_numbers<[1], [0], [0], [1], [0, 0, 1, 1], [], []>} : vector<16x32xf32>, vector<32x32xf32>, vector<16x32xf32> -> vector<16x32xf32>
    %c0_46 = arith.constant 0 : index
    %c0_47 = arith.constant 0 : index
    %c0_48 = arith.constant 0 : index
    %64 = vector.load %arg14[%c0_46, %c0_47, %c0_48] : memref<2x1x32xf32, #tpu.memory_space<vmem>>, vector<1x1x32xf32>
    %65 = vector.shape_cast %64 : vector<1x1x32xf32> to vector<1x32xf32>
    %66 = vector.broadcast %65 : vector<1x32xf32> to vector<16x32xf32>
    %67 = arith.addf %63, %66 : vector<16x32xf32>
    %68 = arith.addf %12, %67 : vector<16x32xf32>
    %c0_49 = arith.constant 0 : index
    %c0_50 = arith.constant 0 : index
    %c0_51 = arith.constant 0 : index
    %69 = vector.load %arg15[%c0_49, %c0_50, %c0_51] : memref<2x1x32xf32, #tpu.memory_space<vmem>>, vector<1x1x32xf32>
    %70 = vector.shape_cast %69 : vector<1x1x32xf32> to vector<1x32xf32>
    %c0_52 = arith.constant 0 : index
    %c0_53 = arith.constant 0 : index
    %c0_54 = arith.constant 0 : index
    %71 = vector.load %arg16[%c0_52, %c0_53, %c0_54] : memref<2x1x32xf32, #tpu.memory_space<vmem>>, vector<1x1x32xf32>
    %72 = vector.shape_cast %71 : vector<1x1x32xf32> to vector<1x32xf32>
    %cst_55 = arith.constant dense<0.000000e+00> : vector<16xf32>
    %73 = vector.multi_reduction <add>, %68, %cst_55 [1] : vector<16x32xf32> to vector<16xf32>
    %74 = vector.shape_cast %73 : vector<16xf32> to vector<16x1xf32>
    %cst_56 = arith.constant 3.200000e+01 : f32
    %75 = vector.broadcast %cst_56 : f32 to vector<16x1xf32>
    %76 = arith.divf %74, %75 : vector<16x1xf32>
    %77 = vector.broadcast %76 : vector<16x1xf32> to vector<16x32xf32>
    %78 = arith.subf %68, %77 : vector<16x32xf32>
    %79 = arith.mulf %78, %78 : vector<16x32xf32>
    %cst_57 = arith.constant dense<0.000000e+00> : vector<16xf32>
    %80 = vector.multi_reduction <add>, %79, %cst_57 [1] : vector<16x32xf32> to vector<16xf32>
    %81 = vector.shape_cast %80 : vector<16xf32> to vector<16x1xf32>
    %cst_58 = arith.constant 3.200000e+01 : f32
    %82 = vector.broadcast %cst_58 : f32 to vector<16x1xf32>
    %83 = arith.divf %81, %82 : vector<16x1xf32>
    %84 = vector.broadcast %76 : vector<16x1xf32> to vector<16x32xf32>
    %85 = arith.subf %68, %84 : vector<16x32xf32>
    %cst_59 = arith.constant 9.99999974E-6 : f32
    %86 = vector.broadcast %cst_59 : f32 to vector<16x1xf32>
    %87 = arith.addf %83, %86 : vector<16x1xf32>
    %88 = math.rsqrt %87 : vector<16x1xf32>
    %89 = vector.broadcast %88 : vector<16x1xf32> to vector<16x32xf32>
    %90 = arith.mulf %85, %89 : vector<16x32xf32>
    %91 = vector.broadcast %70 : vector<1x32xf32> to vector<16x32xf32>
    %92 = arith.mulf %90, %91 : vector<16x32xf32>
    %93 = vector.broadcast %72 : vector<1x32xf32> to vector<16x32xf32>
    %94 = arith.addf %92, %93 : vector<16x32xf32>
    %c0_60 = arith.constant 0 : index
    %c0_61 = arith.constant 0 : index
    %c0_62 = arith.constant 0 : index
    %95 = vector.load %arg17[%c0_60, %c0_61, %c0_62] : memref<2x32x128xf32, #tpu.memory_space<vmem>>, vector<1x32x128xf32>
    %96 = vector.shape_cast %95 : vector<1x32x128xf32> to vector<32x128xf32>
    %cst_63 = arith.constant dense<0.000000e+00> : vector<16x128xf32>
    %97 = tpu.matmul %94, %96, %cst_63 {dimension_numbers = #tpu.dot_dimension_numbers<[1], [0], [0], [1], [0, 0, 1, 1], [], []>} : vector<16x32xf32>, vector<32x128xf32>, vector<16x128xf32> -> vector<16x128xf32>
    %c0_64 = arith.constant 0 : index
    %c0_65 = arith.constant 0 : index
    %c0_66 = arith.constant 0 : index
    %98 = vector.load %arg18[%c0_64, %c0_65, %c0_66] : memref<2x1x128xf32, #tpu.memory_space<vmem>>, vector<1x1x128xf32>
    %99 = vector.shape_cast %98 : vector<1x1x128xf32> to vector<1x128xf32>
    %100 = vector.broadcast %99 : vector<1x128xf32> to vector<16x128xf32>
    %101 = arith.addf %97, %100 : vector<16x128xf32>
    %cst_67 = arith.constant 0.000000e+00 : f32
    %102 = vector.broadcast %cst_67 : f32 to vector<16x128xf32>
    %103 = arith.maximumf %101, %102 : vector<16x128xf32>
    %c0_68 = arith.constant 0 : index
    %c0_69 = arith.constant 0 : index
    %c0_70 = arith.constant 0 : index
    %104 = vector.load %arg19[%c0_68, %c0_69, %c0_70] : memref<2x128x32xf32, #tpu.memory_space<vmem>>, vector<1x128x32xf32>
    %105 = vector.shape_cast %104 : vector<1x128x32xf32> to vector<128x32xf32>
    %cst_71 = arith.constant dense<0.000000e+00> : vector<16x32xf32>
    %106 = tpu.matmul %103, %105, %cst_71 {dimension_numbers = #tpu.dot_dimension_numbers<[1], [0], [0], [1], [0, 0, 1, 1], [], []>} : vector<16x128xf32>, vector<128x32xf32>, vector<16x32xf32> -> vector<16x32xf32>
    %c0_72 = arith.constant 0 : index
    %c0_73 = arith.constant 0 : index
    %c0_74 = arith.constant 0 : index
    %107 = vector.load %arg20[%c0_72, %c0_73, %c0_74] : memref<2x1x32xf32, #tpu.memory_space<vmem>>, vector<1x1x32xf32>
    %108 = vector.shape_cast %107 : vector<1x1x32xf32> to vector<1x32xf32>
    %109 = vector.broadcast %108 : vector<1x32xf32> to vector<16x32xf32>
    %110 = arith.addf %106, %109 : vector<16x32xf32>
    %111 = arith.addf %94, %110 : vector<16x32xf32>
    %c0_75 = arith.constant 0 : index
    %c0_76 = arith.constant 0 : index
    %c0_77 = arith.constant 0 : index
    %112 = vector.load %arg21[%c0_75, %c0_76, %c0_77] : memref<2x1x32xf32, #tpu.memory_space<vmem>>, vector<1x1x32xf32>
    %113 = vector.shape_cast %112 : vector<1x1x32xf32> to vector<1x32xf32>
    %c0_78 = arith.constant 0 : index
    %c0_79 = arith.constant 0 : index
    %c0_80 = arith.constant 0 : index
    %114 = vector.load %arg22[%c0_78, %c0_79, %c0_80] : memref<2x1x32xf32, #tpu.memory_space<vmem>>, vector<1x1x32xf32>
    %115 = vector.shape_cast %114 : vector<1x1x32xf32> to vector<1x32xf32>
    %cst_81 = arith.constant dense<0.000000e+00> : vector<16xf32>
    %116 = vector.multi_reduction <add>, %111, %cst_81 [1] : vector<16x32xf32> to vector<16xf32>
    %117 = vector.shape_cast %116 : vector<16xf32> to vector<16x1xf32>
    %cst_82 = arith.constant 3.200000e+01 : f32
    %118 = vector.broadcast %cst_82 : f32 to vector<16x1xf32>
    %119 = arith.divf %117, %118 : vector<16x1xf32>
    %120 = vector.broadcast %119 : vector<16x1xf32> to vector<16x32xf32>
    %121 = arith.subf %111, %120 : vector<16x32xf32>
    %122 = arith.mulf %121, %121 : vector<16x32xf32>
    %cst_83 = arith.constant dense<0.000000e+00> : vector<16xf32>
    %123 = vector.multi_reduction <add>, %122, %cst_83 [1] : vector<16x32xf32> to vector<16xf32>
    %124 = vector.shape_cast %123 : vector<16xf32> to vector<16x1xf32>
    %cst_84 = arith.constant 3.200000e+01 : f32
    %125 = vector.broadcast %cst_84 : f32 to vector<16x1xf32>
    %126 = arith.divf %124, %125 : vector<16x1xf32>
    %127 = vector.broadcast %119 : vector<16x1xf32> to vector<16x32xf32>
    %128 = arith.subf %111, %127 : vector<16x32xf32>
    %cst_85 = arith.constant 9.99999974E-6 : f32
    %129 = vector.broadcast %cst_85 : f32 to vector<16x1xf32>
    %130 = arith.addf %126, %129 : vector<16x1xf32>
    %131 = math.rsqrt %130 : vector<16x1xf32>
    %132 = vector.broadcast %131 : vector<16x1xf32> to vector<16x32xf32>
    %133 = arith.mulf %128, %132 : vector<16x32xf32>
    %134 = vector.broadcast %113 : vector<1x32xf32> to vector<16x32xf32>
    %135 = arith.mulf %133, %134 : vector<16x32xf32>
    %136 = vector.broadcast %115 : vector<1x32xf32> to vector<16x32xf32>
    %137 = arith.addf %135, %136 : vector<16x32xf32>
    %c1 = arith.constant 1 : index
    %c0_86 = arith.constant 0 : index
    %c0_87 = arith.constant 0 : index
    %138 = vector.load %arg7[%c1, %c0_86, %c0_87] : memref<2x32x32xf32, #tpu.memory_space<vmem>>, vector<1x32x32xf32>
    %139 = vector.shape_cast %138 : vector<1x32x32xf32> to vector<32x32xf32>
    %cst_88 = arith.constant dense<0.000000e+00> : vector<16x32xf32>
    %140 = tpu.matmul %137, %139, %cst_88 {dimension_numbers = #tpu.dot_dimension_numbers<[1], [0], [0], [1], [0, 0, 1, 1], [], []>} : vector<16x32xf32>, vector<32x32xf32>, vector<16x32xf32> -> vector<16x32xf32>
    %c1_89 = arith.constant 1 : index
    %c0_90 = arith.constant 0 : index
    %c0_91 = arith.constant 0 : index
    %141 = vector.load %arg8[%c1_89, %c0_90, %c0_91] : memref<2x1x32xf32, #tpu.memory_space<vmem>>, vector<1x1x32xf32>
    %142 = vector.shape_cast %141 : vector<1x1x32xf32> to vector<1x32xf32>
    %143 = vector.broadcast %142 : vector<1x32xf32> to vector<16x32xf32>
    %144 = arith.addf %140, %143 : vector<16x32xf32>
    %c1_92 = arith.constant 1 : index
    %c0_93 = arith.constant 0 : index
    %c0_94 = arith.constant 0 : index
    %145 = vector.load %arg9[%c1_92, %c0_93, %c0_94] : memref<2x32x32xf32, #tpu.memory_space<vmem>>, vector<1x32x32xf32>
    %146 = vector.shape_cast %145 : vector<1x32x32xf32> to vector<32x32xf32>
    %cst_95 = arith.constant dense<0.000000e+00> : vector<16x32xf32>
    %147 = tpu.matmul %137, %146, %cst_95 {dimension_numbers = #tpu.dot_dimension_numbers<[1], [0], [0], [1], [0, 0, 1, 1], [], []>} : vector<16x32xf32>, vector<32x32xf32>, vector<16x32xf32> -> vector<16x32xf32>
    %c1_96 = arith.constant 1 : index
    %c0_97 = arith.constant 0 : index
    %c0_98 = arith.constant 0 : index
    %148 = vector.load %arg10[%c1_96, %c0_97, %c0_98] : memref<2x1x32xf32, #tpu.memory_space<vmem>>, vector<1x1x32xf32>
    %149 = vector.shape_cast %148 : vector<1x1x32xf32> to vector<1x32xf32>
    %150 = vector.broadcast %149 : vector<1x32xf32> to vector<16x32xf32>
    %151 = arith.addf %147, %150 : vector<16x32xf32>
    %c1_99 = arith.constant 1 : index
    %c0_100 = arith.constant 0 : index
    %c0_101 = arith.constant 0 : index
    %152 = vector.load %arg11[%c1_99, %c0_100, %c0_101] : memref<2x32x32xf32, #tpu.memory_space<vmem>>, vector<1x32x32xf32>
    %153 = vector.shape_cast %152 : vector<1x32x32xf32> to vector<32x32xf32>
    %cst_102 = arith.constant dense<0.000000e+00> : vector<16x32xf32>
    %154 = tpu.matmul %137, %153, %cst_102 {dimension_numbers = #tpu.dot_dimension_numbers<[1], [0], [0], [1], [0, 0, 1, 1], [], []>} : vector<16x32xf32>, vector<32x32xf32>, vector<16x32xf32> -> vector<16x32xf32>
    %c1_103 = arith.constant 1 : index
    %c0_104 = arith.constant 0 : index
    %c0_105 = arith.constant 0 : index
    %155 = vector.load %arg12[%c1_103, %c0_104, %c0_105] : memref<2x1x32xf32, #tpu.memory_space<vmem>>, vector<1x1x32xf32>
    %156 = vector.shape_cast %155 : vector<1x1x32xf32> to vector<1x32xf32>
    %157 = vector.broadcast %156 : vector<1x32xf32> to vector<16x32xf32>
    %158 = arith.addf %154, %157 : vector<16x32xf32>
    %159 = vector.extract_strided_slice %151 {offsets = [0, 0], sizes = [8, 32], strides = [1, 1]} : vector<16x32xf32> to vector<8x32xf32>
    %160 = vector.extract_strided_slice %151 {offsets = [8, 0], sizes = [8, 32], strides = [1, 1]} : vector<16x32xf32> to vector<8x32xf32>
    %161 = arith.subf %159, %160 : vector<8x32xf32>
    %162 = vector.extract_strided_slice %158 {offsets = [0, 0], sizes = [8, 32], strides = [1, 1]} : vector<16x32xf32> to vector<8x32xf32>
    %163 = vector.extract_strided_slice %158 {offsets = [8, 0], sizes = [8, 32], strides = [1, 1]} : vector<16x32xf32> to vector<8x32xf32>
    %164 = arith.subf %162, %163 : vector<8x32xf32>
    %165 = vector.extract_strided_slice %158 {offsets = [8, 0], sizes = [8, 32], strides = [1, 1]} : vector<16x32xf32> to vector<8x32xf32>
    %166 = tpu.concatenate %161, %161 in 0 : vector<8x32xf32>, vector<8x32xf32> -> vector<16x32xf32>
    %167 = arith.mulf %144, %166 : vector<16x32xf32>
    %cst_106 = arith.constant dense<0.000000e+00> : vector<16x4xf32>
    %168 = tpu.matmul %167, %13, %cst_106 {dimension_numbers = #tpu.dot_dimension_numbers<[1], [0], [0], [1], [0, 0, 1, 1], [], []>} : vector<16x32xf32>, vector<32x4xf32>, vector<16x4xf32> -> vector<16x4xf32>
    %cst_107 = arith.constant 0.000000e+00 : f32
    %169 = vector.broadcast %cst_107 : f32 to vector<16x4xf32>
    %170 = arith.subf %169, %168 : vector<16x4xf32>
    %171 = math.exp %170 : vector<16x4xf32>
    %cst_108 = arith.constant 1.000000e+00 : f32
    %172 = vector.broadcast %cst_108 : f32 to vector<16x4xf32>
    %173 = arith.addf %172, %171 : vector<16x4xf32>
    %cst_109 = arith.constant 1.000000e+00 : f32
    %174 = vector.broadcast %cst_109 : f32 to vector<16x4xf32>
    %175 = arith.divf %174, %173 : vector<16x4xf32>
    %cst_110 = arith.constant dense<0.000000e+00> : vector<16x32xf32>
    %176 = tpu.matmul %175, %14, %cst_110 {dimension_numbers = #tpu.dot_dimension_numbers<[1], [0], [0], [1], [0, 0, 1, 1], [], []>} : vector<16x4xf32>, vector<4x32xf32>, vector<16x32xf32> -> vector<16x32xf32>
    %177 = vector.extract_strided_slice %176 {offsets = [0, 0], sizes = [8, 32], strides = [1, 1]} : vector<16x32xf32> to vector<8x32xf32>
    %178 = arith.mulf %177, %164 : vector<8x32xf32>
    %179 = arith.addf %165, %178 : vector<8x32xf32>
    %180 = vector.extract_strided_slice %176 {offsets = [8, 0], sizes = [8, 32], strides = [1, 1]} : vector<16x32xf32> to vector<8x32xf32>
    %181 = arith.mulf %180, %164 : vector<8x32xf32>
    %182 = arith.addf %165, %181 : vector<8x32xf32>
    %183 = tpu.concatenate %179, %182 in 0 : vector<8x32xf32>, vector<8x32xf32> -> vector<16x32xf32>
    %c1_111 = arith.constant 1 : index
    %c0_112 = arith.constant 0 : index
    %c0_113 = arith.constant 0 : index
    %184 = vector.load %arg13[%c1_111, %c0_112, %c0_113] : memref<2x32x32xf32, #tpu.memory_space<vmem>>, vector<1x32x32xf32>
    %185 = vector.shape_cast %184 : vector<1x32x32xf32> to vector<32x32xf32>
    %cst_114 = arith.constant dense<0.000000e+00> : vector<16x32xf32>
    %186 = tpu.matmul %183, %185, %cst_114 {dimension_numbers = #tpu.dot_dimension_numbers<[1], [0], [0], [1], [0, 0, 1, 1], [], []>} : vector<16x32xf32>, vector<32x32xf32>, vector<16x32xf32> -> vector<16x32xf32>
    %c1_115 = arith.constant 1 : index
    %c0_116 = arith.constant 0 : index
    %c0_117 = arith.constant 0 : index
    %187 = vector.load %arg14[%c1_115, %c0_116, %c0_117] : memref<2x1x32xf32, #tpu.memory_space<vmem>>, vector<1x1x32xf32>
    %188 = vector.shape_cast %187 : vector<1x1x32xf32> to vector<1x32xf32>
    %189 = vector.broadcast %188 : vector<1x32xf32> to vector<16x32xf32>
    %190 = arith.addf %186, %189 : vector<16x32xf32>
    %191 = arith.addf %137, %190 : vector<16x32xf32>
    %c1_118 = arith.constant 1 : index
    %c0_119 = arith.constant 0 : index
    %c0_120 = arith.constant 0 : index
    %192 = vector.load %arg15[%c1_118, %c0_119, %c0_120] : memref<2x1x32xf32, #tpu.memory_space<vmem>>, vector<1x1x32xf32>
    %193 = vector.shape_cast %192 : vector<1x1x32xf32> to vector<1x32xf32>
    %c1_121 = arith.constant 1 : index
    %c0_122 = arith.constant 0 : index
    %c0_123 = arith.constant 0 : index
    %194 = vector.load %arg16[%c1_121, %c0_122, %c0_123] : memref<2x1x32xf32, #tpu.memory_space<vmem>>, vector<1x1x32xf32>
    %195 = vector.shape_cast %194 : vector<1x1x32xf32> to vector<1x32xf32>
    %cst_124 = arith.constant dense<0.000000e+00> : vector<16xf32>
    %196 = vector.multi_reduction <add>, %191, %cst_124 [1] : vector<16x32xf32> to vector<16xf32>
    %197 = vector.shape_cast %196 : vector<16xf32> to vector<16x1xf32>
    %cst_125 = arith.constant 3.200000e+01 : f32
    %198 = vector.broadcast %cst_125 : f32 to vector<16x1xf32>
    %199 = arith.divf %197, %198 : vector<16x1xf32>
    %200 = vector.broadcast %199 : vector<16x1xf32> to vector<16x32xf32>
    %201 = arith.subf %191, %200 : vector<16x32xf32>
    %202 = arith.mulf %201, %201 : vector<16x32xf32>
    %cst_126 = arith.constant dense<0.000000e+00> : vector<16xf32>
    %203 = vector.multi_reduction <add>, %202, %cst_126 [1] : vector<16x32xf32> to vector<16xf32>
    %204 = vector.shape_cast %203 : vector<16xf32> to vector<16x1xf32>
    %cst_127 = arith.constant 3.200000e+01 : f32
    %205 = vector.broadcast %cst_127 : f32 to vector<16x1xf32>
    %206 = arith.divf %204, %205 : vector<16x1xf32>
    %207 = vector.broadcast %199 : vector<16x1xf32> to vector<16x32xf32>
    %208 = arith.subf %191, %207 : vector<16x32xf32>
    %cst_128 = arith.constant 9.99999974E-6 : f32
    %209 = vector.broadcast %cst_128 : f32 to vector<16x1xf32>
    %210 = arith.addf %206, %209 : vector<16x1xf32>
    %211 = math.rsqrt %210 : vector<16x1xf32>
    %212 = vector.broadcast %211 : vector<16x1xf32> to vector<16x32xf32>
    %213 = arith.mulf %208, %212 : vector<16x32xf32>
    %214 = vector.broadcast %193 : vector<1x32xf32> to vector<16x32xf32>
    %215 = arith.mulf %213, %214 : vector<16x32xf32>
    %216 = vector.broadcast %195 : vector<1x32xf32> to vector<16x32xf32>
    %217 = arith.addf %215, %216 : vector<16x32xf32>
    %218 = vector.extract_strided_slice %217 {offsets = [8, 0], sizes = [8, 32], strides = [1, 1]} : vector<16x32xf32> to vector<8x32xf32>
    %c1_129 = arith.constant 1 : index
    %c0_130 = arith.constant 0 : index
    %c0_131 = arith.constant 0 : index
    %219 = vector.load %arg17[%c1_129, %c0_130, %c0_131] : memref<2x32x128xf32, #tpu.memory_space<vmem>>, vector<1x32x128xf32>
    %220 = vector.shape_cast %219 : vector<1x32x128xf32> to vector<32x128xf32>
    %cst_132 = arith.constant dense<0.000000e+00> : vector<8x128xf32>
    %221 = tpu.matmul %218, %220, %cst_132 {dimension_numbers = #tpu.dot_dimension_numbers<[1], [0], [0], [1], [0, 0, 1, 1], [], []>} : vector<8x32xf32>, vector<32x128xf32>, vector<8x128xf32> -> vector<8x128xf32>
    %c1_133 = arith.constant 1 : index
    %c0_134 = arith.constant 0 : index
    %c0_135 = arith.constant 0 : index
    %222 = vector.load %arg18[%c1_133, %c0_134, %c0_135] : memref<2x1x128xf32, #tpu.memory_space<vmem>>, vector<1x1x128xf32>
    %223 = vector.shape_cast %222 : vector<1x1x128xf32> to vector<1x128xf32>
    %224 = vector.broadcast %223 : vector<1x128xf32> to vector<8x128xf32>
    %225 = arith.addf %221, %224 : vector<8x128xf32>
    %cst_136 = arith.constant 0.000000e+00 : f32
    %226 = vector.broadcast %cst_136 : f32 to vector<8x128xf32>
    %227 = arith.maximumf %225, %226 : vector<8x128xf32>
    %c1_137 = arith.constant 1 : index
    %c0_138 = arith.constant 0 : index
    %c0_139 = arith.constant 0 : index
    %228 = vector.load %arg19[%c1_137, %c0_138, %c0_139] : memref<2x128x32xf32, #tpu.memory_space<vmem>>, vector<1x128x32xf32>
    %229 = vector.shape_cast %228 : vector<1x128x32xf32> to vector<128x32xf32>
    %cst_140 = arith.constant dense<0.000000e+00> : vector<8x32xf32>
    %230 = tpu.matmul %227, %229, %cst_140 {dimension_numbers = #tpu.dot_dimension_numbers<[1], [0], [0], [1], [0, 0, 1, 1], [], []>} : vector<8x128xf32>, vector<128x32xf32>, vector<8x32xf32> -> vector<8x32xf32>
    %c1_141 = arith.constant 1 : index
    %c0_142 = arith.constant 0 : index
    %c0_143 = arith.constant 0 : index
    %231 = vector.load %arg20[%c1_141, %c0_142, %c0_143] : memref<2x1x32xf32, #tpu.memory_space<vmem>>, vector<1x1x32xf32>
    %232 = vector.shape_cast %231 : vector<1x1x32xf32> to vector<1x32xf32>
    %233 = vector.broadcast %232 : vector<1x32xf32> to vector<8x32xf32>
    %234 = arith.addf %230, %233 : vector<8x32xf32>
    %235 = arith.addf %218, %234 : vector<8x32xf32>
    %c1_144 = arith.constant 1 : index
    %c0_145 = arith.constant 0 : index
    %c0_146 = arith.constant 0 : index
    %236 = vector.load %arg21[%c1_144, %c0_145, %c0_146] : memref<2x1x32xf32, #tpu.memory_space<vmem>>, vector<1x1x32xf32>
    %237 = vector.shape_cast %236 : vector<1x1x32xf32> to vector<1x32xf32>
    %c1_147 = arith.constant 1 : index
    %c0_148 = arith.constant 0 : index
    %c0_149 = arith.constant 0 : index
    %238 = vector.load %arg22[%c1_147, %c0_148, %c0_149] : memref<2x1x32xf32, #tpu.memory_space<vmem>>, vector<1x1x32xf32>
    %239 = vector.shape_cast %238 : vector<1x1x32xf32> to vector<1x32xf32>
    %cst_150 = arith.constant dense<0.000000e+00> : vector<8xf32>
    %240 = vector.multi_reduction <add>, %235, %cst_150 [1] : vector<8x32xf32> to vector<8xf32>
    %241 = vector.shape_cast %240 : vector<8xf32> to vector<8x1xf32>
    %cst_151 = arith.constant 3.200000e+01 : f32
    %242 = vector.broadcast %cst_151 : f32 to vector<8x1xf32>
    %243 = arith.divf %241, %242 : vector<8x1xf32>
    %244 = vector.broadcast %243 : vector<8x1xf32> to vector<8x32xf32>
    %245 = arith.subf %235, %244 : vector<8x32xf32>
    %246 = arith.mulf %245, %245 : vector<8x32xf32>
    %cst_152 = arith.constant dense<0.000000e+00> : vector<8xf32>
    %247 = vector.multi_reduction <add>, %246, %cst_152 [1] : vector<8x32xf32> to vector<8xf32>
    %248 = vector.shape_cast %247 : vector<8xf32> to vector<8x1xf32>
    %cst_153 = arith.constant 3.200000e+01 : f32
    %249 = vector.broadcast %cst_153 : f32 to vector<8x1xf32>
    %250 = arith.divf %248, %249 : vector<8x1xf32>
    %251 = vector.broadcast %243 : vector<8x1xf32> to vector<8x32xf32>
    %252 = arith.subf %235, %251 : vector<8x32xf32>
    %cst_154 = arith.constant 9.99999974E-6 : f32
    %253 = vector.broadcast %cst_154 : f32 to vector<8x1xf32>
    %254 = arith.addf %250, %253 : vector<8x1xf32>
    %255 = math.rsqrt %254 : vector<8x1xf32>
    %256 = vector.broadcast %255 : vector<8x1xf32> to vector<8x32xf32>
    %257 = arith.mulf %252, %256 : vector<8x32xf32>
    %258 = vector.broadcast %237 : vector<1x32xf32> to vector<8x32xf32>
    %259 = arith.mulf %257, %258 : vector<8x32xf32>
    %260 = vector.broadcast %239 : vector<1x32xf32> to vector<8x32xf32>
    %261 = arith.addf %259, %260 : vector<8x32xf32>
    %cst_155 = arith.constant dense<0.000000e+00> : vector<8xf32>
    %262 = vector.multi_reduction <add>, %261, %cst_155 [1] : vector<8x32xf32> to vector<8xf32>
    %263 = vector.shape_cast %262 : vector<8xf32> to vector<8x1xf32>
    %cst_156 = arith.constant 3.200000e+01 : f32
    %264 = vector.broadcast %cst_156 : f32 to vector<8x1xf32>
    %265 = arith.divf %263, %264 : vector<8x1xf32>
    %266 = vector.broadcast %265 : vector<8x1xf32> to vector<8x32xf32>
    %267 = arith.subf %261, %266 : vector<8x32xf32>
    %268 = arith.mulf %267, %267 : vector<8x32xf32>
    %cst_157 = arith.constant dense<0.000000e+00> : vector<8xf32>
    %269 = vector.multi_reduction <add>, %268, %cst_157 [1] : vector<8x32xf32> to vector<8xf32>
    %270 = vector.shape_cast %269 : vector<8xf32> to vector<8x1xf32>
    %cst_158 = arith.constant 3.200000e+01 : f32
    %271 = vector.broadcast %cst_158 : f32 to vector<8x1xf32>
    %272 = arith.divf %270, %271 : vector<8x1xf32>
    %273 = vector.broadcast %265 : vector<8x1xf32> to vector<8x32xf32>
    %274 = arith.subf %261, %273 : vector<8x32xf32>
    %cst_159 = arith.constant 9.99999974E-6 : f32
    %275 = vector.broadcast %cst_159 : f32 to vector<8x1xf32>
    %276 = arith.addf %272, %275 : vector<8x1xf32>
    %277 = math.rsqrt %276 : vector<8x1xf32>
    %278 = vector.broadcast %277 : vector<8x1xf32> to vector<8x32xf32>
    %279 = arith.mulf %274, %278 : vector<8x32xf32>
    %c0_160 = arith.constant 0 : index
    %c0_161 = arith.constant 0 : index
    %280 = vector.load %arg25[%c0_160, %c0_161] : memref<32x128xf32, #tpu.memory_space<vmem>>, vector<32x128xf32>
    %cst_162 = arith.constant dense<0.000000e+00> : vector<8x128xf32>
    %281 = tpu.matmul %279, %280, %cst_162 {dimension_numbers = #tpu.dot_dimension_numbers<[1], [0], [0], [1], [0, 0, 1, 1], [], []>} : vector<8x32xf32>, vector<32x128xf32>, vector<8x128xf32> -> vector<8x128xf32>
    %c0_163 = arith.constant 0 : index
    %c0_164 = arith.constant 0 : index
    %282 = vector.load %arg26[%c0_163, %c0_164] : memref<1x128xf32, #tpu.memory_space<vmem>>, vector<1x128xf32>
    %283 = vector.broadcast %282 : vector<1x128xf32> to vector<8x128xf32>
    %284 = arith.addf %281, %283 : vector<8x128xf32>
    %c0_165 = arith.constant 0 : index
    %c0_166 = arith.constant 0 : index
    %285 = vector.load %arg27[%c0_165, %c0_166] : memref<8x128xf32, #tpu.memory_space<vmem>>, vector<8x128xf32>
    tpu.vector_store %arg27[%c0_165, %c0_166], %284 {strides = array<i32>} : memref<8x128xf32, #tpu.memory_space<vmem>>, vector<8x128xf32>,
    return
  }
  func.func @transform_0(%arg0: i32) -> (i32, i32) {
    %c0_i32 = arith.constant 0 : i32
    %c0_i32_0 = arith.constant 0 : i32
    return %arg0, %c0_i32 : i32, i32
  }
  func.func @transform_1(%arg0: i32) -> (i32, i32) {
    %c0_i32 = arith.constant 0 : i32
    %c0_i32_0 = arith.constant 0 : i32
    return %arg0, %c0_i32 : i32, i32
  }
  func.func @transform_2(%arg0: i32) -> (i32, i32) {
    %c0_i32 = arith.constant 0 : i32
    %c0_i32_0 = arith.constant 0 : i32
    %c0_i32_1 = arith.constant 0 : i32
    return %c0_i32, %c0_i32_0 : i32, i32
  }
  func.func @transform_3(%arg0: i32) -> (i32, i32) {
    %c0_i32 = arith.constant 0 : i32
    %c0_i32_0 = arith.constant 0 : i32
    %c0_i32_1 = arith.constant 0 : i32
    return %c0_i32, %c0_i32_0 : i32, i32
  }
  func.func @transform_4(%arg0: i32) -> (i32, i32) {
    %c0_i32 = arith.constant 0 : i32
    %c0_i32_0 = arith.constant 0 : i32
    %c0_i32_1 = arith.constant 0 : i32
    return %c0_i32, %c0_i32_0 : i32, i32
  }
  func.func @transform_5(%arg0: i32) -> (i32, i32) {
    %c0_i32 = arith.constant 0 : i32
    %c0_i32_0 = arith.constant 0 : i32
    %c0_i32_1 = arith.constant 0 : i32
    return %c0_i32, %c0_i32_0 : i32, i32
  }
  func.func @transform_6(%arg0: i32) -> (i32, i32, i32) {
    %c0_i32 = arith.constant 0 : i32
    %c0_i32_0 = arith.constant 0 : i32
    %c0_i32_1 = arith.constant 0 : i32
    %c0_i32_2 = arith.constant 0 : i32
    return %c0_i32, %c0_i32_0, %c0_i32_1 : i32, i32, i32
  }
  func.func @transform_7(%arg0: i32) -> (i32, i32, i32) {
    %c0_i32 = arith.constant 0 : i32
    %c0_i32_0 = arith.constant 0 : i32
    %c0_i32_1 = arith.constant 0 : i32
    %c0_i32_2 = arith.constant 0 : i32
    return %c0_i32, %c0_i32_0, %c0_i32_1 : i32, i32, i32
  }
  func.func @transform_8(%arg0: i32) -> (i32, i32, i32) {
    %c0_i32 = arith.constant 0 : i32
    %c0_i32_0 = arith.constant 0 : i32
    %c0_i32_1 = arith.constant 0 : i32
    %c0_i32_2 = arith.constant 0 : i32
    return %c0_i32, %c0_i32_0, %c0_i32_1 : i32, i32, i32
  }
  func.func @transform_9(%arg0: i32) -> (i32, i32, i32) {
    %c0_i32 = arith.constant 0 : i32
    %c0_i32_0 = arith.constant 0 : i32
    %c0_i32_1 = arith.constant 0 : i32
    %c0_i32_2 = arith.constant 0 : i32
    return %c0_i32, %c0_i32_0, %c0_i32_1 : i32, i32, i32
  }
  func.func @transform_10(%arg0: i32) -> (i32, i32, i32) {
    %c0_i32 = arith.constant 0 : i32
    %c0_i32_0 = arith.constant 0 : i32
    %c0_i32_1 = arith.constant 0 : i32
    %c0_i32_2 = arith.constant 0 : i32
    return %c0_i32, %c0_i32_0, %c0_i32_1 : i32, i32, i32
  }
  func.func @transform_11(%arg0: i32) -> (i32, i32, i32) {
    %c0_i32 = arith.constant 0 : i32
    %c0_i32_0 = arith.constant 0 : i32
    %c0_i32_1 = arith.constant 0 : i32
    %c0_i32_2 = arith.constant 0 : i32
    return %c0_i32, %c0_i32_0, %c0_i32_1 : i32, i32, i32
  }
  func.func @transform_12(%arg0: i32) -> (i32, i32, i32) {
    %c0_i32 = arith.constant 0 : i32
    %c0_i32_0 = arith.constant 0 : i32
    %c0_i32_1 = arith.constant 0 : i32
    %c0_i32_2 = arith.constant 0 : i32
    return %c0_i32, %c0_i32_0, %c0_i32_1 : i32, i32, i32
  }
  func.func @transform_13(%arg0: i32) -> (i32, i32, i32) {
    %c0_i32 = arith.constant 0 : i32
    %c0_i32_0 = arith.constant 0 : i32
    %c0_i32_1 = arith.constant 0 : i32
    %c0_i32_2 = arith.constant 0 : i32
    return %c0_i32, %c0_i32_0, %c0_i32_1 : i32, i32, i32
  }
  func.func @transform_14(%arg0: i32) -> (i32, i32, i32) {
    %c0_i32 = arith.constant 0 : i32
    %c0_i32_0 = arith.constant 0 : i32
    %c0_i32_1 = arith.constant 0 : i32
    %c0_i32_2 = arith.constant 0 : i32
    return %c0_i32, %c0_i32_0, %c0_i32_1 : i32, i32, i32
  }
  func.func @transform_15(%arg0: i32) -> (i32, i32, i32) {
    %c0_i32 = arith.constant 0 : i32
    %c0_i32_0 = arith.constant 0 : i32
    %c0_i32_1 = arith.constant 0 : i32
    %c0_i32_2 = arith.constant 0 : i32
    return %c0_i32, %c0_i32_0, %c0_i32_1 : i32, i32, i32
  }
  func.func @transform_16(%arg0: i32) -> (i32, i32, i32) {
    %c0_i32 = arith.constant 0 : i32
    %c0_i32_0 = arith.constant 0 : i32
    %c0_i32_1 = arith.constant 0 : i32
    %c0_i32_2 = arith.constant 0 : i32
    return %c0_i32, %c0_i32_0, %c0_i32_1 : i32, i32, i32
  }
  func.func @transform_17(%arg0: i32) -> (i32, i32, i32) {
    %c0_i32 = arith.constant 0 : i32
    %c0_i32_0 = arith.constant 0 : i32
    %c0_i32_1 = arith.constant 0 : i32
    %c0_i32_2 = arith.constant 0 : i32
    return %c0_i32, %c0_i32_0, %c0_i32_1 : i32, i32, i32
  }
  func.func @transform_18(%arg0: i32) -> (i32, i32, i32) {
    %c0_i32 = arith.constant 0 : i32
    %c0_i32_0 = arith.constant 0 : i32
    %c0_i32_1 = arith.constant 0 : i32
    %c0_i32_2 = arith.constant 0 : i32
    return %c0_i32, %c0_i32_0, %c0_i32_1 : i32, i32, i32
  }
  func.func @transform_19(%arg0: i32) -> (i32, i32, i32) {
    %c0_i32 = arith.constant 0 : i32
    %c0_i32_0 = arith.constant 0 : i32
    %c0_i32_1 = arith.constant 0 : i32
    %c0_i32_2 = arith.constant 0 : i32
    return %c0_i32, %c0_i32_0, %c0_i32_1 : i32, i32, i32
  }
  func.func @transform_20(%arg0: i32) -> (i32, i32, i32) {
    %c0_i32 = arith.constant 0 : i32
    %c0_i32_0 = arith.constant 0 : i32
    %c0_i32_1 = arith.constant 0 : i32
    %c0_i32_2 = arith.constant 0 : i32
    return %c0_i32, %c0_i32_0, %c0_i32_1 : i32, i32, i32
  }
  func.func @transform_21(%arg0: i32) -> (i32, i32, i32) {
    %c0_i32 = arith.constant 0 : i32
    %c0_i32_0 = arith.constant 0 : i32
    %c0_i32_1 = arith.constant 0 : i32
    %c0_i32_2 = arith.constant 0 : i32
    return %c0_i32, %c0_i32_0, %c0_i32_1 : i32, i32, i32
  }
  func.func @transform_22(%arg0: i32) -> (i32, i32) {
    %c0_i32 = arith.constant 0 : i32
    %c0_i32_0 = arith.constant 0 : i32
    %c0_i32_1 = arith.constant 0 : i32
    return %c0_i32, %c0_i32_0 : i32, i32
  }
  func.func @transform_23(%arg0: i32) -> (i32, i32) {
    %c0_i32 = arith.constant 0 : i32
    %c0_i32_0 = arith.constant 0 : i32
    %c0_i32_1 = arith.constant 0 : i32
    return %c0_i32, %c0_i32_0 : i32, i32
  }
  func.func @transform_24(%arg0: i32) -> (i32, i32) {
    %c0_i32 = arith.constant 0 : i32
    %c0_i32_0 = arith.constant 0 : i32
    %c0_i32_1 = arith.constant 0 : i32
    return %c0_i32, %c0_i32_0 : i32, i32
  }
  func.func @transform_25(%arg0: i32) -> (i32, i32) {
    %c0_i32 = arith.constant 0 : i32
    %c0_i32_0 = arith.constant 0 : i32
    %c0_i32_1 = arith.constant 0 : i32
    return %c0_i32, %c0_i32_0 : i32, i32
  }
  func.func @transform_26(%arg0: i32) -> (i32, i32) {
    %c0_i32 = arith.constant 0 : i32
    %c0_i32_0 = arith.constant 0 : i32
    return %arg0, %c0_i32 : i32, i32
  }
}

</mosaic_0001>

<bundles_post_ra>
// kernel: tpu_custom_call.1
= control target key start
LH: loop header
LB: loop body
LE: loop exit
PB: predicated region body
PF: predicated region fallthrough
CT: control target
= control target key end

     0   :  { %s3942_s0 = inlined_call_operand.hbm [shape: f32[8,16], index: 0, kind: input, shape index: {}]   ;;  %s3943_s1 = inlined_call_operand.hbm [shape: f32[8,8], index: 1, kind: input, shape index: {}]   ;;  %s3944_s2 = inlined_call_operand.hbm [shape: f32[16,32], index: 2, kind: input, shape index: {}]   ;;  %s3945_s3 = inlined_call_operand.hbm [shape: f32[1,32], index: 3, kind: input, shape index: {}]   ;;  %s3946_s4 = inlined_call_operand.vmem [shape: f32[8,32], index: 4, kind: input, shape index: {}]   ;;  %s3947_s5 = inlined_call_operand.hbm [shape: f32[1,32], index: 5, kind: input, shape index: {}]   ;;  %s3948_s6 = inlined_call_operand.vmem [shape: f32[2,32,32], index: 6, kind: input, shape index: {}]   ;;  %s3949_s7 = inlined_call_operand.hbm [shape: f32[2,1,32], index: 7, kind: input, shape index: {}]   ;;  %s3950_s8 = inlined_call_operand.vmem [shape: f32[2,32,32], index: 8, kind: input, shape index: {}]   ;;  %s3951_s9 = inlined_call_operand.hbm [shape: f32[2,1,32], index: 9, kind: input, shape index: {}]   ;;  %s3952_s10 = inlined_call_operand.vmem [shape: f32[2,32,32], index: 10, kind: input, shape index: {}]   ;;  %s3953_s11 = inlined_call_operand.hbm [shape: f32[2,1,32], index: 11, kind: input, shape index: {}]   ;;  %s3954_s12 = inlined_call_operand.vmem [shape: f32[2,32,32], index: 12, kind: input, shape index: {}]   ;;  %s3955_s13 = inlined_call_operand.hbm [shape: f32[2,1,32], index: 13, kind: input, shape index: {}]   ;;  %s3956_s14 = inlined_call_operand.hbm [shape: f32[2,1,32], index: 14, kind: input, shape index: {}]   ;;  %s3957_s15 = inlined_call_operand.hbm [shape: f32[2,1,32], index: 15, kind: input, shape index: {}]   ;;  %s3958_s16 = inlined_call_operand.vmem [shape: f32[2,32,128], index: 16, kind: input, shape index: {}]   ;;  %s3959_s17 = inlined_call_operand.hbm [shape: f32[2,1,128], index: 17, kind: input, shape index: {}]   ;;  %s3960_s18 = inlined_call_operand.vmem [shape: f32[2,128,32], index: 18, kind: input, shape index: {}]   ;;  %s3961_s19 = inlined_call_operand.hbm [shape: f32[2,1,32], index: 19, kind: input, shape index: {}]   ;;  %s3962_s20 = inlined_call_operand.vmem [shape: f32[2,1,32], index: 20, kind: input, shape index: {}]   ;;  %s3963_s21 = inlined_call_operand.hbm [shape: f32[2,1,32], index: 21, kind: input, shape index: {}]   ;;  %s3964_s22 = inlined_call_operand.vmem [shape: f32[32,4], index: 22, kind: input, shape index: {}]   ;;  %s3965_s23 = inlined_call_operand.vmem [shape: f32[4,32], index: 23, kind: input, shape index: {}]   ;;  %s3966_s24 = inlined_call_operand.vmem [shape: f32[32,128], index: 24, kind: input, shape index: {}]   ;;  %s3967_s25 = inlined_call_operand.vmem [shape: f32[1,128], index: 25, kind: input, shape index: {}]   ;;  %s3968_s26 = inlined_call_operand.hbm [shape: f32[8,128], index: 26, kind: output, shape index: {}]  }
   0x1   :  { %3980 = sst [smem:[#allocation35_spill]] %s3942_s0 }
   0x2   :  { %3981 = sst [smem:[#allocation36_spill]] %s3943_s1 }
   0x3   :  { %3982 = sst [smem:[#allocation37_spill]] %s3944_s2 }
   0x4   :  { %3983 = sst [smem:[#allocation38_spill]] %s3945_s3 }
   0x5   :  { %3984 = sst [smem:[#allocation39_spill]] %s3946_s4 }
   0x6   :  { %3985 = sst [smem:[#allocation40_spill]] %s3947_s5 }
   0x7   :  { %3986 = sst [smem:[#allocation41_spill]] %s3948_s6 }
   0x8   :  { %3987 = sst [smem:[#allocation42_spill]] %s3949_s7 }
   0x9   :  { %3988 = sst [smem:[#allocation43_spill]] %s3950_s8 }
   0xa   :  { %3989 = sst [smem:[#allocation44_spill]] %s3951_s9 }
   0xb   :  { %3990 = sst [smem:[#allocation45_spill]] %s3952_s10 }
   0xc   :  { %3991 = sst [smem:[#allocation46_spill]] %s3967_s25 }
   0xd   :  { %3992 = sst [smem:[#allocation47_spill]] %s3968_s26 }
   0xe   :  { %31 = vsyncpa [#allocation3], 0 }
   0xf   :  { %32 = vsyncpa [#allocation6], 0 }
  0x10   :  { %33 = vsyncpa [#allocation9], 0 }
  0x11   :  { %34 = vsyncpa [#allocation12], 0 }
  0x12   :  { %35 = vsyncpa [#allocation15], 0 }
  0x13   :  { %36 = vsyncpa [#allocation18], 0 }
  0x14   :  { %37 = vsyncpa [#allocation21], 0 }
  0x15   :  { %38 = vsyncpa [#allocation24], 0 }
  0x16   :  { %39 = vsyncpa [#allocation4], 0  ;;  %s3186_s27 = smov [#allocation5]   ;;  %s3187_s7 = smov [#allocation8]  }
  0x17   :  { %s56_s3 = sshll.u32 %s3186_s27, 4  ;;  %s78_s28 = sshll.u32 %s3187_s7, 4  ;;  %s57_s3 = int_to_ptr.vmem [resolvable:$true] %s56_s3  ;;  %s79_s28 = int_to_ptr.vmem [resolvable:$true] %s78_s28 }
  0x18   :  { %s3993_s29 = sld [smem:[#allocation36_spill]] }
  0x1e   :  { %s2838_s0 = scalar_lea.hbm %s3993_s29, 128 }
  0x1f   :  { %p2839_p0 = scmp.ne.s32.totalorder %s3993_s29, %s2838_s0  ;;  %p2842_p1 = scmp.lt.u32.totalorder %s2838_s0, %s3993_s29 }
  0x21   :  { %p2844_p2 = pnand %p2842_p1, %p2839_p0 }
  0x23   :  { %2847 = shalt.err (!%p2844_p2)
}
  0x24   :  { %s2848_s10 = scalar_lea.vmem %s57_s3, 128  ;;  %p2853_p4 = scmp.lt.s32.totalorder %s57_s3, %s57_s3 }
  0x25   :  { %p2849_p3 = scmp.ne.s32.totalorder %s57_s3, %s2848_s10  ;;  %p2854_p5 = scmp.lt.s32.totalorder %s2848_s10, %s2848_s10 }
  0x27   :  { %p2855_p6 = por %p2854_p5, %p2853_p4 }
  0x29   :  { %p2856_p7 = pnand %p2855_p6, %p2849_p3 }
  0x2b   :  { %2859 = shalt.err (!%p2856_p7)
}
  0x2c   :  { %59 = dma.hbm_to_vmem [thread:$0]  %s3993_s29, 128, %s57_s3, [#allocation6]  }
  0x2d   :  { %s3994_s8 = sld [smem:[#allocation38_spill]] }
  0x33   :  { %s2860_s4 = scalar_lea.hbm %s3994_s8, 16 }
  0x34   :  { %p2861_p8 = scmp.ne.s32.totalorder %s3994_s8, %s2860_s4  ;;  %p2864_p9 = scmp.lt.u32.totalorder %s2860_s4, %s3994_s8 }
  0x36   :  { %p2866_p10 = pnand %p2864_p9, %p2861_p8 }
  0x38   :  { %2869 = shalt.err (!%p2866_p10)
}
  0x39   :  { %s2870_s5 = scalar_lea.vmem %s79_s28, 16  ;;  %s2874_s10 = scalar_lea.vmem %s79_s28, 32 }
  0x3a   :  { %p2871_p11 = scmp.ne.s32.totalorder %s79_s28, %s2870_s5  ;;  %p2875_p12 = scmp.lt.s32.totalorder %s79_s28, %s79_s28 }
  0x3b   :  { %p2876_p13 = scmp.lt.s32.totalorder %s2874_s10, %s2870_s5 }
  0x3d   :  { %p2877_p0 = por %p2876_p13, %p2875_p12 }
  0x3f   :  { %p2878_p1 = pnand %p2877_p0, %p2871_p11 }
  0x41   :  { %2881 = shalt.err (!%p2878_p1)
}
  0x42   :  { %81 = dma.hbm_to_vmem [thread:$0]  %s3994_s8, 16, %s79_s28, [#allocation9]  }
  0x43   :  { %s3188_s6 = smov [#allocation11]   ;;  %s3995_s4 = sld [smem:[#allocation42_spill]] }
  0x44   :  { %s101_s1 = sshll.u32 %s3188_s6, 4  ;;  %s102_s1 = int_to_ptr.vmem [resolvable:$true] %s101_s1 }
  0x49   :  { %s2882_s9 = scalar_lea.hbm %s3995_s4, 32 }
  0x4a   :  { %p2883_p2 = scmp.ne.s32.totalorder %s3995_s4, %s2882_s9  ;;  %p2886_p3 = scmp.lt.u32.totalorder %s2882_s9, %s3995_s4 }
  0x4c   :  { %p2888_p4 = pnand %p2886_p3, %p2883_p2 }
  0x4e   :  { %2891 = shalt.err (!%p2888_p4)
}
  0x4f   :  { %s2892_s10 = scalar_lea.vmem %s102_s1, 32  ;;  %p2897_p6 = scmp.lt.s32.totalorder %s102_s1, %s102_s1 }
  0x50   :  { %p2893_p5 = scmp.ne.s32.totalorder %s102_s1, %s2892_s10  ;;  %p2898_p7 = scmp.lt.s32.totalorder %s2892_s10, %s2892_s10 }
  0x52   :  { %p2899_p8 = por %p2898_p7, %p2897_p6 }
  0x54   :  { %p2900_p9 = pnand %p2899_p8, %p2893_p5 }
  0x56   :  { %2903 = shalt.err (!%p2900_p9)
}
  0x57   :  { %s3189_s28 = smov 16   ;;  %s3190_s8 = smov 1  }
  0x58   :  { %107 = dma.hbm_to_vmem [thread:$0]  %s3995_s4, 32, %s102_s1, [#allocation12], %s3189_s28, %s3189_s28, %s3190_s8  }
  0x59   :  { %s3191_s6 = smov [#allocation14]   ;;  %s3192_s7 = smov [#allocation17]  }
  0x5a   :  { %s129_s27 = sshll.u32 %s3191_s6, 4  ;;  %s155_s9 = sshll.u32 %s3192_s7, 4  ;;  %s130_s27 = int_to_ptr.vmem [resolvable:$true] %s129_s27  ;;  %s156_s9 = int_to_ptr.vmem [resolvable:$true] %s155_s9 }
  0x5b   :  { %s2904_s2 = scalar_lea.hbm %s3953_s11, 32 }
  0x5c   :  { %p2905_p10 = scmp.ne.s32.totalorder %s3953_s11, %s2904_s2  ;;  %p2908_p11 = scmp.lt.u32.totalorder %s2904_s2, %s3953_s11 }
  0x5e   :  { %p2910_p12 = pnand %p2908_p11, %p2905_p10 }
  0x60   :  { %2913 = shalt.err (!%p2910_p12)
}
  0x61   :  { %s2914_s1 = scalar_lea.vmem %s130_s27, 32  ;;  %p2919_p0 = scmp.lt.s32.totalorder %s130_s27, %s130_s27 }
  0x62   :  { %p2915_p13 = scmp.ne.s32.totalorder %s130_s27, %s2914_s1  ;;  %p2920_p1 = scmp.lt.s32.totalorder %s2914_s1, %s2914_s1 }
  0x64   :  { %p2921_p2 = por %p2920_p1, %p2919_p0 }
  0x66   :  { %p2922_p3 = pnand %p2921_p2, %p2915_p13 }
  0x68   :  { %2925 = shalt.err (!%p2922_p3)
}
  0x69   :  { %135 = dma.hbm_to_vmem [thread:$0]  %s3953_s11, 32, %s130_s27, [#allocation15], %s3189_s28, %s3189_s28, %s3190_s8  }
  0x6a   :  { %s2926_s26 = scalar_lea.hbm %s3956_s14, 32 }
  0x6b   :  { %p2927_p4 = scmp.ne.s32.totalorder %s3956_s14, %s2926_s26  ;;  %p2930_p5 = scmp.lt.u32.totalorder %s2926_s26, %s3956_s14 }
  0x6d   :  { %p2932_p6 = pnand %p2930_p5, %p2927_p4 }
  0x6f   :  { %2935 = shalt.err (!%p2932_p6)
}
  0x70   :  { %s2936_s2 = scalar_lea.vmem %s156_s9, 32  ;;  %p2941_p8 = scmp.lt.s32.totalorder %s156_s9, %s156_s9 }
  0x71   :  { %p2937_p7 = scmp.ne.s32.totalorder %s156_s9, %s2936_s2  ;;  %p2942_p9 = scmp.lt.s32.totalorder %s2936_s2, %s2936_s2 }
  0x73   :  { %p2943_p10 = por %p2942_p9, %p2941_p8 }
  0x75   :  { %p2944_p11 = pnand %p2943_p10, %p2937_p7 }
  0x77   :  { %2947 = shalt.err (!%p2944_p11)
}
  0x78   :  { %161 = dma.hbm_to_vmem [thread:$0]  %s3956_s14, 32, %s156_s9, [#allocation18], %s3189_s28, %s3189_s28, %s3190_s8  }
  0x79   :  { %s3193_s5 = smov [#allocation20]   ;;  %s3194_s1 = smov [#allocation2]  }
  0x7a   :  { %s181_s10 = sshll.u32 %s3193_s5, 4  ;;  %s46_s4 = sshll.u32 %s3194_s1, 4  ;;  %s182_s10 = int_to_ptr.vmem [resolvable:$true] %s181_s10  ;;  %s47_s4 = int_to_ptr.vmem [resolvable:$true] %s46_s4 }
  0x7b   :  { %s2948_s25 = scalar_lea.hbm %s3959_s17, 32 }
  0x7c   :  { %p2949_p12 = scmp.ne.s32.totalorder %s3959_s17, %s2948_s25  ;;  %p2952_p13 = scmp.lt.u32.totalorder %s2948_s25, %s3959_s17 }
  0x7e   :  { %p2954_p0 = pnand %p2952_p13, %p2949_p12 }
  0x80   :  { %2957 = shalt.err (!%p2954_p0)
}
  0x81   :  { %s2958_s14 = scalar_lea.vmem %s182_s10, 32  ;;  %p2963_p2 = scmp.lt.s32.totalorder %s182_s10, %s182_s10 }
  0x82   :  { %p2959_p1 = scmp.ne.s32.totalorder %s182_s10, %s2958_s14  ;;  %p2964_p3 = scmp.lt.s32.totalorder %s2958_s14, %s2958_s14 }
  0x84   :  { %p2965_p4 = por %p2964_p3, %p2963_p2 }
  0x86   :  { %p2966_p5 = pnand %p2965_p4, %p2959_p1 }
  0x88   :  { %2969 = shalt.err (!%p2966_p5)
}
  0x89   :  { %187 = dma.hbm_to_vmem [thread:$0]  %s3959_s17, 32, %s182_s10, [#allocation21], %s3189_s28, %s3189_s28, %s3190_s8  }
  0x8a   :  { %s3996_s27 = sld [smem:[#allocation35_spill]] }
  0x90   :  { %s2970_s5 = scalar_lea.hbm %s3996_s27, 128 }
  0x91   :  { %p2971_p6 = scmp.ne.s32.totalorder %s3996_s27, %s2970_s5  ;;  %p2974_p7 = scmp.lt.u32.totalorder %s2970_s5, %s3996_s27 }
  0x93   :  { %p2976_p8 = pnand %p2974_p7, %p2971_p6 }
  0x95   :  { %2979 = shalt.err (!%p2976_p8)
}
  0x96   :  { %s2980_s26 = scalar_lea.vmem %s47_s4, 128  ;;  %p2985_p10 = scmp.lt.s32.totalorder %s47_s4, %s47_s4 }
  0x97   :  { %p2981_p9 = scmp.ne.s32.totalorder %s47_s4, %s2980_s26  ;;  %p2986_p11 = scmp.lt.s32.totalorder %s2980_s26, %s2980_s26 }
  0x99   :  { %p2987_p12 = por %p2986_p11, %p2985_p10 }
  0x9b   :  { %p2988_p13 = pnand %p2987_p12, %p2981_p9 }
  0x9d   :  { %2991 = shalt.err (!%p2988_p13)
}
  0x9e   :  { %49 = dma.hbm_to_vmem [thread:$0]  %s3996_s27, 128, %s47_s4, [#allocation3]  }
  0x9f   :  { %s3195_s6 = smov [#allocation7]   ;;  %s3997_s9 = sld [smem:[#allocation37_spill]] }
  0xa0   :  { %s65_s7 = sshll.u32 %s3195_s6, 4  ;;  %s66_s7 = int_to_ptr.vmem [resolvable:$true] %s65_s7 }
  0xa5   :  { %s2992_s0 = scalar_lea.hbm %s3997_s9, 256 }
  0xa6   :  { %p2993_p0 = scmp.ne.s32.totalorder %s3997_s9, %s2992_s0  ;;  %p2996_p1 = scmp.lt.u32.totalorder %s2992_s0, %s3997_s9 }
  0xa8   :  { %p2998_p2 = pnand %p2996_p1, %p2993_p0 }
  0xaa   :  { %3001 = shalt.err (!%p2998_p2)
}
  0xab   :  { %s3002_s3 = scalar_lea.vmem %s66_s7, 256  ;;  %p3007_p4 = scmp.lt.s32.totalorder %s66_s7, %s66_s7 }
  0xac   :  { %p3003_p3 = scmp.ne.s32.totalorder %s66_s7, %s3002_s3  ;;  %p3008_p5 = scmp.lt.s32.totalorder %s3002_s3, %s3002_s3 }
  0xae   :  { %p3009_p6 = por %p3008_p5, %p3007_p4 }
  0xb0   :  { %p3010_p7 = pnand %p3009_p6, %p3003_p3 }
  0xb2   :  { %3013 = shalt.err (!%p3010_p7)
}
  0xb3   :  { %s3196_s4 = smov 128   ;;  %s3197_s27 = smov 8  }
  0xb4   :  { %71 = dma.hbm_to_vmem [thread:$0]  %s3997_s9, 256, %s66_s7, [#allocation6], %s3196_s4, %s3196_s4, %s3197_s27  }
  0xb5   :  { %s3198_s26 = smov [#allocation10]   ;;  %s3199_s10 = smov [#allocation13]  }
  0xb6   :  { %s90_s17 = sshll.u32 %s3198_s26, 4  ;;  %s115_s6 = sshll.u32 %s3199_s10, 4  ;;  %s91_s17 = int_to_ptr.vmem [resolvable:$true] %s90_s17  ;;  %s3451_s6 = int_to_ptr.vmem [resolvable:$true] %s115_s6 }
  0xb7   :  { %s3998_s0 = sld [smem:[#allocation40_spill]] }
  0xbd   :  { %s3014_s2 = scalar_lea.hbm %s3998_s0, 16 }
  0xbe   :  { %p3015_p8 = scmp.ne.s32.totalorder %s3998_s0, %s3014_s2  ;;  %p3018_p9 = scmp.lt.u32.totalorder %s3014_s2, %s3998_s0 }
  0xc0   :  { %p3020_p10 = pnand %p3018_p9, %p3015_p8 }
  0xc2   :  { %3023 = shalt.err (!%p3020_p10)
}
  0xc3   :  { %s3024_s7 = scalar_lea.vmem %s91_s17, 16  ;;  %s3028_s9 = scalar_lea.vmem %s91_s17, 32 }
  0xc4   :  { %p3025_p11 = scmp.ne.s32.totalorder %s91_s17, %s3024_s7  ;;  %p3029_p12 = scmp.lt.s32.totalorder %s91_s17, %s91_s17 }
  0xc5   :  { %p3030_p13 = scmp.lt.s32.totalorder %s3028_s9, %s3024_s7 }
  0xc7   :  { %p3031_p0 = por %p3030_p13, %p3029_p12 }
  0xc9   :  { %p3032_p1 = pnand %p3031_p0, %p3025_p11 }
  0xcb   :  { %3035 = shalt.err (!%p3032_p1)
}
  0xcc   :  { %93 = dma.hbm_to_vmem [thread:$0]  %s3998_s0, 16, %s91_s17, [#allocation9]  }
  0xcd   :  { %s3999_s26 = sld [smem:[#allocation44_spill]] }
  0xd3   :  { %s3036_s10 = scalar_lea.hbm %s3999_s26, 32 }
  0xd4   :  { %p3037_p2 = scmp.ne.s32.totalorder %s3999_s26, %s3036_s10  ;;  %p3040_p3 = scmp.lt.u32.totalorder %s3036_s10, %s3999_s26 }
  0xd6   :  { %p3042_p4 = pnand %p3040_p3, %p3037_p2 }
  0xd8   :  { %3045 = shalt.err (!%p3042_p4)
}
  0xd9   :  { %s3046_s5 = scalar_lea.vmem %s3451_s6, 32  ;;  %p3051_p6 = scmp.lt.s32.totalorder %s3451_s6, %s3451_s6 }
  0xda   :  { %p3047_p5 = scmp.ne.s32.totalorder %s3451_s6, %s3046_s5  ;;  %p3052_p7 = scmp.lt.s32.totalorder %s3046_s5, %s3046_s5 }
  0xdc   :  { %p3053_p8 = por %p3052_p7, %p3051_p6 }
  0xde   :  { %p3054_p9 = pnand %p3053_p8, %p3047_p5 }
  0xe0   :  { %3057 = shalt.err (!%p3054_p9)
}
  0xe1   :  { %121 = dma.hbm_to_vmem [thread:$0]  %s3999_s26, 32, %s3451_s6, [#allocation12], %s3189_s28, %s3189_s28, %s3190_s8  }
  0xe2   :  { %s3200_s1 = smov [#allocation16]   ;;  %s3201_s7 = smov [#allocation19]  }
  0xe3   :  { %s143_s3 = sshll.u32 %s3200_s1, 4  ;;  %s167_s9 = sshll.u32 %s3201_s7, 4  ;;  %s144_s3 = int_to_ptr.vmem [resolvable:$true] %s143_s3  ;;  %s3485_s9 = int_to_ptr.vmem [resolvable:$true] %s167_s9 }
  0xe4   :  { %s3058_s29 = scalar_lea.hbm %s3955_s13, 32 }
  0xe5   :  { %p3059_p10 = scmp.ne.s32.totalorder %s3955_s13, %s3058_s29  ;;  %p3062_p11 = scmp.lt.u32.totalorder %s3058_s29, %s3955_s13 }
  0xe7   :  { %p3064_p12 = pnand %p3062_p11, %p3059_p10 }
  0xe9   :  { %3067 = shalt.err (!%p3064_p12)
}
  0xea   :  { %s3068_s6 = scalar_lea.vmem %s144_s3, 32  ;;  %p3073_p0 = scmp.lt.s32.totalorder %s144_s3, %s144_s3 }
  0xeb   :  { %p3069_p13 = scmp.ne.s32.totalorder %s144_s3, %s3068_s6  ;;  %p3074_p1 = scmp.lt.s32.totalorder %s3068_s6, %s3068_s6 }
  0xed   :  { %p3075_p2 = por %p3074_p1, %p3073_p0 }
  0xef   :  { %p3076_p3 = pnand %p3075_p2, %p3069_p13 }
  0xf1   :  { %3079 = shalt.err (!%p3076_p3)
}
  0xf2   :  { %149 = dma.hbm_to_vmem [thread:$0]  %s3955_s13, 32, %s144_s3, [#allocation15], %s3189_s28, %s3189_s28, %s3190_s8  }
  0xf3   :  { %s3080_s17 = scalar_lea.hbm %s3957_s15, 32 }
  0xf4   :  { %p3081_p4 = scmp.ne.s32.totalorder %s3957_s15, %s3080_s17  ;;  %p3084_p5 = scmp.lt.u32.totalorder %s3080_s17, %s3957_s15 }
  0xf6   :  { %p3086_p6 = pnand %p3084_p5, %p3081_p4 }
  0xf8   :  { %3089 = shalt.err (!%p3086_p6)
}
  0xf9   :  { %s3090_s27 = scalar_lea.vmem %s3485_s9, 32  ;;  %p3095_p8 = scmp.lt.s32.totalorder %s3485_s9, %s3485_s9 }
  0xfa   :  { %p3091_p7 = scmp.ne.s32.totalorder %s3485_s9, %s3090_s27  ;;  %p3096_p9 = scmp.lt.s32.totalorder %s3090_s27, %s3090_s27 }
  0xfc   :  { %p3097_p10 = por %p3096_p9, %p3095_p8 }
  0xfe   :  { %p3098_p11 = pnand %p3097_p10, %p3091_p7 }
 0x100   :  { %3101 = shalt.err (!%p3098_p11)
}
 0x101   :  { %173 = dma.hbm_to_vmem [thread:$0]  %s3957_s15, 32, %s3485_s9, [#allocation18], %s3189_s28, %s3189_s28, %s3190_s8  }
 0x102   :  { %s3202_s29 = smov [#allocation22]   ;;  %s3203_s10 = smov [#allocation23]  }
 0x103   :  { %s195_s25 = sshll.u32 %s3202_s29, 4  ;;  %s209_s30 = sshll.u32 %s3203_s10, 4  ;;  %s196_s25 = int_to_ptr.vmem [resolvable:$true] %s195_s25  ;;  %s3522_s30 = int_to_ptr.vmem [resolvable:$true] %s209_s30 }
 0x104   :  { %s3102_s26 = scalar_lea.hbm %s3961_s19, 32 }
 0x105   :  { %p3103_p12 = scmp.ne.s32.totalorder %s3961_s19, %s3102_s26  ;;  %p3106_p13 = scmp.lt.u32.totalorder %s3102_s26, %s3961_s19 }
 0x107   :  { %p3108_p0 = pnand %p3106_p13, %p3103_p12 }
 0x109   :  { %3111 = shalt.err (!%p3108_p0)
}
 0x10a   :  { %s3112_s15 = scalar_lea.vmem %s196_s25, 32  ;;  %p3117_p2 = scmp.lt.s32.totalorder %s196_s25, %s196_s25 }
 0x10b   :  { %p3113_p1 = scmp.ne.s32.totalorder %s196_s25, %s3112_s15  ;;  %p3118_p3 = scmp.lt.s32.totalorder %s3112_s15, %s3112_s15 }
 0x10d   :  { %p3119_p4 = por %p3118_p3, %p3117_p2 }
 0x10f   :  { %p3120_p5 = pnand %p3119_p4, %p3113_p1 }
 0x111   :  { %3123 = shalt.err (!%p3120_p5)
}
 0x112   :  { %201 = dma.hbm_to_vmem [thread:$0]  %s3961_s19, 32, %s196_s25, [#allocation21], %s3189_s28, %s3189_s28, %s3190_s8  }
 0x113   :  { %s3124_s4 = scalar_lea.hbm %s3963_s21, 32 }
 0x114   :  { %p3125_p6 = scmp.ne.s32.totalorder %s3963_s21, %s3124_s4  ;;  %p3128_p7 = scmp.lt.u32.totalorder %s3124_s4, %s3963_s21 }
 0x116   :  { %p3130_p8 = pnand %p3128_p7, %p3125_p6 }
 0x118   :  { %3133 = shalt.err (!%p3130_p8)
}
 0x119   :  { %s3134_s10 = scalar_lea.vmem %s3522_s30, 32  ;;  %p3139_p10 = scmp.lt.s32.totalorder %s3522_s30, %s3522_s30 }
 0x11a   :  { %p3135_p9 = scmp.ne.s32.totalorder %s3522_s30, %s3134_s10  ;;  %p3140_p11 = scmp.lt.s32.totalorder %s3134_s10, %s3134_s10 }
 0x11c   :  { %p3141_p12 = por %p3140_p11, %p3139_p10 }
 0x11e   :  { %p3142_p13 = pnand %p3141_p12, %p3135_p9 }
 0x120   :  { %3145 = shalt.err (!%p3142_p13)
}
 0x121   :  { %215 = dma.hbm_to_vmem [thread:$0]  %s3963_s21, 32, %s3522_s30, [#allocation24], %s3189_s28, %s3189_s28, %s3190_s8  }
 0x122   :  { %3168 = dma.done.wait [#allocation3], 128  }
 0x123   :  { %3169 = vsyncadd [#allocation3], 4294967168 }
 0x124   :  { %3170 = dma.done.wait [#allocation6], 384  }
 0x125   :  { %3171 = vsyncadd [#allocation6], 4294966912 }
 0x126   :  { %3172 = dma.done.wait [#allocation9], 32  }
 0x127   :  { %3173 = vsyncadd [#allocation9], 4294967264 }
 0x128   :  { %3174 = dma.done.wait [#allocation12], 64  }
 0x129   :  { %3175 = vsyncadd [#allocation12], 4294967232 }
 0x12a   :  { %3176 = dma.done.wait [#allocation15], 64  }
 0x12b   :  { %3177 = vsyncadd [#allocation15], 4294967232 }
 0x12c   :  { %3178 = dma.done.wait [#allocation18], 64  }
 0x12d   :  { %3179 = vsyncadd [#allocation18], 4294967232 }
 0x12e   :  { %3180 = dma.done.wait [#allocation21], 64  }
 0x12f   :  { %3181 = vsyncadd [#allocation21], 4294967232 }
 0x130   :  { %3182 = dma.done.wait [#allocation24], 32  }
 0x131   :  { %3183 = vsyncadd [#allocation24], 4294967264  ;;  %v3204_v0 = vmov 0.0|0.0   ;;  %vm3205_vm0 = vmmov 0   ;;  %v3206_v1 = vmov 0.0   ;;  %v267_v2 = vld [vmem:[#allocation7] sm:$0xff] }
 0x132   :  { %2627 = vmatprep.subr.bf16.mxu0 %v3204_v0  ;;  %2396 = vmatprep.mubr.msk.f32.mxu0 %vm3205_vm0, %v3206_v1  ;;  %v268_v3 = vld [vmem:[#allocation7 + $0x8] sm:$0xff]  ;;  %s4000_s8 = sld [smem:[#allocation41_spill]]  ;;  %s4001_s2 = sld [smem:[#allocation45_spill]]  ;;  %v266_v9 = vld [vmem:[#allocation2] sm:$0xff]  ;;  %vm276_vm1 = vcmask 130048   ;;  %v350_v13 = vld [vmem:[#allocation5] sm:$0xff] }
 0x133   :  { %v2628_v4 = vpack.c.bf16 %v268_v3, %v267_v2  ;;  %s4002_s9 = sld [smem:[#allocation39_spill]]  ;;  %vm359_vm2 = vcmask 64512   ;;  %s4003_s25 = sld [smem:[#allocation43_spill]]  ;;  %v2178_v23 = vld [vmem:[#allocation8] ss:$0 sm:$0xff]  ;;  %vm449_vm3 = vcmask 261120  }
 0x134   :  { %v2180_v27 = vld [vmem:[#allocation10] ss:$0 sm:$0xff]  ;;  %v434_v35 = vld [vmem:[%s3964_s22 + $0x8] sm:$0xff]  ;;  %v435_v37 = vld [vmem:[%s3964_s22 + $0x10] sm:$0xff]  ;;  %vm807_vm4 = vcmask 1043456   ;;  %vm800_vm5 = vcmask 31744  }
 0x135   :  { %2629 = vmatpush3.bf16.msra.mxu0 %v2628_v4  ;;  %v433_v34 = vld [vmem:[%s3964_s22] sm:$0xff]  ;;  %v436_v38 = vld [vmem:[%s3964_s22 + $0x18] sm:$0xff]  ;;  %v2188_v40 = vld [vmem:[#allocation14] ss:$0 sm:$0xff]  ;;  %s3207_s10 = smov [#allocation25]  }
 0x136   :  { %2399 = vmatprep.subr.mxu0 %v3206_v1  ;;  %v3626_v36 = vpack.c.bf16 %v434_v35, %v433_v34  ;;  %v3636_v39 = vpack.c.bf16 %v436_v38, %v435_v37  ;;  %v2185_v48 = vld [vmem:[#allocation13] ss:$0 sm:$0xff]  ;;  %v2182_v50 = vld [vmem:[#allocation11] ss:$0 sm:$0xff]  ;;  %v3645_v59 = vld [vmem:[%s3965_s23] sm:$0xf] }
 0x137   :  { %v890_v60 = vld [vmem:[%s3954_s12] sm:$0xff]  ;;  %v891_v61 = vld [vmem:[%s3954_s12 + $0x8] sm:$0xff]  ;;  %s4004_s23 = sld [smem:[#allocation46_spill]]  ;;  %s2162_s19 = sshll.u32 %s3207_s10, 4  ;;  %s2163_s19 = int_to_ptr.vmem [resolvable:$true] %s2162_s19 }
 0x138   :  { %v438_v5 = vld [vmem:[%s4000_s8] sm:$0xff]  ;;  %v439_v6 = vld [vmem:[%s4000_s8 + $0x8] sm:$0xff]  ;;  %2397 = vmatmul.mubr.msk.f32.vlgmr.msra.gmra.mrb[0].mxu0 %vm276_vm1, %v266_v9  ;;  %v440_v14 = vld [vmem:[%s4000_s8 + $0x10] sm:$0xff]  ;;  %v2662_v62 = vpack.c.bf16 %v891_v61, %v890_v60  ;;  %p3151_p1 = scmp.lt.s32.totalorder %s2163_s19, %s2163_s19 }
 0x139   :  { %v617_v7 = vld [vmem:[%s4001_s2] sm:$0xff]  ;;  %v618_v8 = vld [vmem:[%s4001_s2 + $0x8] sm:$0xff]  ;;  %v2630_v12 = vpack.c.bf16 %v439_v6, %v438_v5  ;;  %2401 = vmatprep.mubr.msk.f32.mxu0 %vm3205_vm0, %v3206_v1  ;;  %v441_v15 = vld [vmem:[%s4000_s8 + $0x18] sm:$0xff] }
 0x13a   :  { %v2646_v10 = vpack.c.bf16 %v618_v8, %v617_v7  ;;  %v351_v11 = vld [vmem:[%s4002_s9] sm:$0xff]  ;;  %v2634_v16 = vpack.c.bf16 %v441_v15, %v440_v14  ;;  %v619_v17 = vld [vmem:[%s4001_s2 + $0x10] sm:$0xff]  ;;  %v620_v18 = vld [vmem:[%s4001_s2 + $0x18] sm:$0xff] }
 0x13b   :  { %2400 = vmatpush3.msra.mxu0 %v351_v11  ;;  %v2650_v19 = vpack.c.bf16 %v620_v18, %v619_v17  ;;  %v531_v20 = vld [vmem:[%s4003_s25] sm:$0xff]  ;;  %v532_v21 = vld [vmem:[%s4003_s25 + $0x8] sm:$0xff]  ;;  %v533_v28 = vld [vmem:[%s4003_s25 + $0x10] sm:$0xff] }
 0x13c   :  { %2647 = vmatprep.subr.bf16.mxu1 %v2646_v10  ;;  %2631 = vmatprep.subr.bf16.mxu0 %v2630_v12  ;;  %v2638_v22 = vpack.c.bf16 %v532_v21, %v531_v20  ;;  %v534_v29 = vld [vmem:[%s4003_s25 + $0x18] sm:$0xff] }
 0x13d   :  { %2649 = vmatpush3.bf16.msra.mxu1 %v2646_v10  ;;  %2402 = vmatmul.mubr.msk.f32.vlgmr.msra.gmra.mrb[2].mxu0 %vm359_vm2, %v350_v13  ;;  %v2642_v33 = vpack.c.bf16 %v534_v29, %v533_v28  ;;  %v892_v13 = vld [vmem:[%s3954_s12 + $0x10] sm:$0xff]  ;;  %v893_v14 = vld [vmem:[%s3954_s12 + $0x18] sm:$0xff] }
 0x13e   :  { %2633 = vmatpush3.bf16.msra.mxu0 %v2630_v12  ;;  %2651 = vmatprep.subr.bf16.mxu1 %v2650_v19  ;;  %v2666_v15 = vpack.c.bf16 %v893_v14, %v892_v13  ;;  %v1130_v60 = vld [vmem:[%s3960_s18 + $0x38] sm:$0xff] }
 0x13f   :  { %2635 = vmatprep.subr.bf16.mxu0 %v2634_v16 }
 0x141   :  { %2653 = vmatpush3.bf16.msra.mxu1 %v2650_v19 }
 0x142   :  { %2637 = vmatpush3.bf16.msra.mxu0 %v2634_v16  ;;  %2448 = vmatprep.subr.msk.mxu1 %vm807_vm4, %v3645_v59 }
 0x143   :  { %2639 = vmatprep.subr.bf16.mxu0 %v2638_v22 }
 0x20b   :  { %v346_v24 = vpop.f32.mrb[0].mxu0 }
 0x20c   :  { %v3598_v25 = vadd.f32 %v2178_v23, %v346_v24  ;;  %v2398_v26 = vpop.f32.mrb[1].mxu0 }
 0x20e   :  { %2412 = vmatprep.mubr.msk.f32.mxu0 %vm449_vm3, %v3598_v25  ;;  %2434 = vmatprep.mubr.msk.f32.mxu1 %vm449_vm3, %v3598_v25 }
 0x210   :  { %v429_v30 = vpop.f32.mrb[2].mxu0 }
 0x211   :  { %v3610_v31 = vadd.f32 %v2180_v27, %v429_v30  ;;  %v2403_v32 = vpop.f32.mrb[3].mxu0 }
 0x213   :  { %2413 = vmatmul.mubr.msk.f32.vlgmr.msra.gmra.mrb[4].mxu0 %vm449_vm3, %v3610_v31  ;;  %2435 = vmatmul.mubr.msk.f32.vlgmr.msra.gmra.mrb[0].mxu1 %vm449_vm3, %v3610_v31 }
 0x214   :  { %2641 = vmatpush3.bf16.msra.mxu0 %v2638_v22  ;;  %2423 = vmatprep.mubr.msk.f32.mxu0 %vm449_vm3, %v3598_v25  ;;  %v2196_v22 = vld [vmem:[#allocation16] ss:$0 sm:$0xff] }
 0x215   :  { %2643 = vmatprep.subr.bf16.mxu0 %v2642_v33  ;;  %2449 = vmatpush3.msk.msra.mxu1 %vm807_vm4, %v3645_v59 }
 0x218   :  { %2645 = vmatpush3.bf16.msra.mxu0 %v2642_v33 }
 0x219   :  { %2655 = vmatprep.subr.bf16.mxu0 %v3626_v36 }
 0x21b   :  { %2424 = vmatmul.mubr.msk.f32.vlgmr.msra.gmra.mrb[6].mxu0 %vm449_vm3, %v3610_v31 }
 0x21c   :  { %2657 = vmatpush3.bf16.msra.mxu0 %v3626_v36 }
 0x21d   :  { %2659 = vmatprep.subr.bf16.mxu0 %v3636_v39 }
 0x220   :  { %2661 = vmatpush3.bf16.msra.mxu0 %v3636_v39 }
 0x221   :  { %2663 = vmatprep.subr.bf16.mxu0 %v2662_v62 }
 0x2e6   :  { %v2414_v41 = vpop.f32.mrb[4].mxu0  ;;  %v2436_v42 = vpop.f32.mrb[0].mxu1 }
 0x2e7   :  { %v700_v43 = vadd.f32 %v2436_v42, %v2188_v40  ;;  %v522_v44 = vpop.f32.mrb[5].mxu0  ;;  %v694_v45 = vpop.f32.mrb[1].mxu1  ;;  %v528_v54 = vadd.f32 %v2414_v41, %v2182_v50 }
 0x2e8   :  { %v695_v46 = vadd.f32 %v2188_v40, %v694_v45  ;;  %v523_v55 = vadd.f32 %v2182_v50, %v522_v44  ;;  %v1030_v44 = vld [vmem:[%s3958_s16 + $0x8] sm:$0xff] }
 0x2e9   :  { %v1124_v50 = vld [vmem:[%s3960_s18 + $0x8] sm:$0xff] }
 0x2ea   :  { %v704_v47 = vsub.f32 %v695_v46, %v700_v43  ;;  %v1031_v46 = vld [vmem:[%s3958_s16 + $0x10] sm:$0xff] }
 0x2ee   :  { %v2425_v49 = vpop.f32.mrb[6].mxu0 }
 0x2ef   :  { %v614_v51 = vadd.f32 %v2425_v49, %v2185_v48  ;;  %v608_v52 = vpop.f32.mrb[7].mxu0  ;;  %v1123_v49 = vld [vmem:[%s3960_s18] sm:$0xff] }
 0x2f0   :  { %v609_v53 = vadd.f32 %v2185_v48, %v608_v52  ;;  %v2678_v52 = vpack.c.bf16 %v1124_v50, %v1123_v49 }
 0x2f2   :  { %v703_v56 = vsub.f32 %v609_v53, %v614_v51  ;;  %v1125_v51 = vld [vmem:[%s3960_s18 + $0x10] sm:$0xff]  ;;  %v1126_v53 = vld [vmem:[%s3960_s18 + $0x18] sm:$0xff] }
 0x2f4   :  { %v705_v57 = vmul.f32 %v703_v56, %v523_v55  ;;  %v706_v58 = vmul.f32 %v703_v56, %v528_v54  ;;  %v2682_v54 = vpack.c.bf16 %v1126_v53, %v1125_v51  ;;  %v1127_v55 = vld [vmem:[%s3960_s18 + $0x20] sm:$0xff]  ;;  %v1128_v56 = vld [vmem:[%s3960_s18 + $0x28] sm:$0xff] }
 0x2f6   :  { %2445 = vmatprep.mubr.msk.f32.mxu0 %vm449_vm3, %v705_v57  ;;  %v2686_v57 = vpack.c.bf16 %v1128_v56, %v1127_v55  ;;  %v2207_v55 = vld [vmem:[%s4000_s8 + $0x20] sm:$0xff]  ;;  %v2208_v56 = vld [vmem:[%s4000_s8 + $0x28] sm:$0xff] }
 0x2f7   :  { %2446 = vmatmul.mubr.msk.f32.vlgmr.msra.gmra.mrb[8].mxu0 %vm449_vm3, %v706_v58  ;;  %v1129_v58 = vld [vmem:[%s3960_s18 + $0x30] sm:$0xff] }
 0x2f8   :  { %2665 = vmatpush3.bf16.msra.mxu0 %v2662_v62  ;;  %v2690_v61 = vpack.c.bf16 %v1130_v60, %v1129_v58  ;;  %v1131_v62 = vld [vmem:[%s3960_s18 + $0x40] sm:$0xff]  ;;  %v2209_v58 = vld [vmem:[%s4000_s8 + $0x30] sm:$0xff]  ;;  %v2210_v60 = vld [vmem:[%s4000_s8 + $0x38] sm:$0xff] }
 0x2f9   :  { %2667 = vmatprep.subr.bf16.mxu0 %v2666_v15 }
 0x2fc   :  { %2669 = vmatpush3.bf16.msra.mxu0 %v2666_v15 }
 0x2fd   :  { %2679 = vmatprep.subr.bf16.mxu0 %v2678_v52 }
 0x3ca   :  { %v2447_v63 = vpop.f32.mrb[8].mxu0 }
 0x3cb   :  { %v789_v2 = vsub.f32 0.0, %v2447_v63  ;;  %v779_v3 = vpop.f32.mrb[9].mxu0  ;;  %v1132_v63 = vld [vmem:[%s3960_s18 + $0x48] sm:$0xff] }
 0x3cc   :  { %v788_v4 = vsub.f32 0.0, %v779_v3  ;;  %v1133_v3 = vld [vmem:[%s3960_s18 + $0x50] sm:$0xff] }
 0x3cd   :  { %v792_v5 = vmul.f32 1.442695, %v789_v2  ;;  %v2694_v2 = vpack.c.bf16 %v1132_v63, %v1131_v62  ;;  %v2214_v62 = vld [vmem:[%s4003_s25 + $0x20] sm:$0xff]  ;;  %v2215_v63 = vld [vmem:[%s4003_s25 + $0x28] sm:$0xff] }
 0x3ce   :  { %v790_v6 = vmul.f32 1.442695, %v788_v4  ;;  %v1134_v4 = vld [vmem:[%s3960_s18 + $0x58] sm:$0xff] }
 0x3cf   :  { %2808 = vpow2.f32 %v792_v5  ;;  %v2698_v5 = vpack.c.bf16 %v1134_v4, %v1133_v3 }
 0x3d0   :  { %2810 = vpow2.f32 %v790_v6  ;;  %v1135_v6 = vld [vmem:[%s3960_s18 + $0x60] sm:$0xff] }
 0x3d9   :  { %v2809_v7 = vpop.eup %2808 }
 0x3da   :  { %v2811_v8 = vpop.eup %2810  ;;  %v795_v9 = vadd.f32 1.0, %v2809_v7  ;;  %v1136_v7 = vld [vmem:[%s3960_s18 + $0x68] sm:$0xff] }
 0x3db   :  { %v794_v10 = vadd.f32 1.0, %v2811_v8  ;;  %v2702_v8 = vpack.c.bf16 %v1136_v7, %v1135_v6 }
 0x3dd   :  { %2812 = vrcp.f32 %v794_v10 }
 0x3de   :  { %2814 = vrcp.f32 %v795_v9 }
 0x3e7   :  { %v2813_v11 = vpop.eup %2812 }
 0x3e8   :  { %v2815_v12 = vpop.eup %2814  ;;  %2450 = vmatprep.mubr.msk.f32.mxu1 %vm800_vm5, %v2813_v11 }
 0x3e9   :  { %2451 = vmatmul.mubr.msk.f32.vlgmr.msra.gmra.mrb[2].mxu1 %vm800_vm5, %v2815_v12 }
 0x4bc   :  { %v2452_v16 = vpop.f32.mrb[2].mxu1 }
 0x4bd   :  { %v888_v17 = vmul.f32 %v2452_v16, %v704_v47  ;;  %v877_v18 = vpop.f32.mrb[3].mxu1  ;;  %v2199_v16 = vld [vmem:[#allocation17] ss:$0 sm:$0xff] }
 0x4be   :  { %v886_v19 = vmul.f32 %v877_v18, %v704_v47  ;;  %v1032_v47 = vld [vmem:[%s3958_s16 + $0x18] sm:$0xff]  ;;  %v2200_v18 = vld [vmem:[#allocation19] ss:$0 sm:$0xff] }
 0x4bf   :  { %v889_v20 = vadd.f32 %v888_v17, %v700_v43  ;;  %v2674_v48 = vpack.c.bf16 %v1032_v47, %v1031_v46 }
 0x4c0   :  { %v887_v21 = vadd.f32 %v886_v19, %v700_v43  ;;  %v1029_v43 = vld [vmem:[%s3958_s16] sm:$0xff] }
 0x4c1   :  { %v2670_v45 = vpack.c.bf16 %v1030_v44, %v1029_v43 }
 0x4c2   :  { %2461 = vmatprep.mubr.msk.f32.mxu0 %vm449_vm3, %v887_v21 }
 0x4c3   :  { %2462 = vmatmul.mubr.msk.f32.vlgmr.msra.gmra.mrb[10].mxu0 %vm449_vm3, %v889_v20  ;;  %2671 = vmatprep.subr.bf16.mxu1 %v2670_v45 }
 0x4c4   :  { %2673 = vmatpush3.bf16.msra.mxu1 %v2670_v45  ;;  %2681 = vmatpush3.bf16.msra.mxu0 %v2678_v52 }
 0x4c5   :  { %2675 = vmatprep.subr.bf16.mxu1 %v2674_v48  ;;  %2683 = vmatprep.subr.bf16.mxu0 %v2682_v54 }
 0x4c8   :  { %2677 = vmatpush3.bf16.msra.mxu1 %v2674_v48  ;;  %2685 = vmatpush3.bf16.msra.mxu0 %v2682_v54 }
 0x4c9   :  { %2687 = vmatprep.subr.bf16.mxu0 %v2686_v57 }
 0x4cc   :  { %2689 = vmatpush3.bf16.msra.mxu0 %v2686_v57  ;;  %v2710_v57 = vpack.c.bf16 %v2208_v56, %v2207_v55 }
 0x4cd   :  { %2691 = vmatprep.subr.bf16.mxu0 %v2690_v61 }
 0x4ce   :  { %2711 = vmatprep.subr.bf16.mxu1 %v2710_v57 }
 0x4d0   :  { %2693 = vmatpush3.bf16.msra.mxu0 %v2690_v61  ;;  %v2714_v61 = vpack.c.bf16 %v2210_v60, %v2209_v58 }
 0x4d1   :  { %2695 = vmatprep.subr.bf16.mxu0 %v2694_v2 }
 0x4d4   :  { %2697 = vmatpush3.bf16.msra.mxu0 %v2694_v2  ;;  %v2718_v2 = vpack.c.bf16 %v2215_v63, %v2214_v62  ;;  %v2235_v62 = vld [vmem:[%s3954_s12 + $0x30] sm:$0xff]  ;;  %v2236_v63 = vld [vmem:[%s3954_s12 + $0x38] sm:$0xff] }
 0x4d5   :  { %2699 = vmatprep.subr.bf16.mxu0 %v2698_v5 }
 0x4d8   :  { %2701 = vmatpush3.bf16.msra.mxu0 %v2698_v5 }
 0x4d9   :  { %2703 = vmatprep.subr.bf16.mxu0 %v2702_v8 }
 0x4dc   :  { %2705 = vmatpush3.bf16.msra.mxu0 %v2702_v8 }
 0x596   :  { %v2463_v23 = vpop.f32.mrb[10].mxu0 }
 0x597   :  { %v973_v24 = vpop.f32.mrb[11].mxu0  ;;  %v979_v26 = vadd.f32 %v2463_v23, %v2196_v22 }
 0x598   :  { %v974_v27 = vadd.f32 %v2196_v22, %v973_v24 }
 0x599   :  { %v983_v30 = vadd.f32 %v979_v26, %v3610_v31  ;;  %v1137_v26 = vld [vmem:[%s3960_s18 + $0x70] sm:$0xff] }
 0x59a   :  { %v982_v28 = vadd.f32 %v974_v27, %v3598_v25  ;;  %v1138_v27 = vld [vmem:[%s3960_s18 + $0x78] sm:$0xff] }
 0x59b   :  { %v989_v32 = vsel %vm449_vm3, %v983_v30, 0.0 }
 0x59c   :  { %v986_v29 = vsel %vm449_vm3, %v982_v28, 0.0 }
 0x59d   :  { %987 = vadd.xlane.f32.xlu0 %v986_v29  ;;  %v2201_v29 = vld [vmem:[#allocation20] ss:$0 sm:$0xff] }
 0x5a1   :  { %990 = vadd.xlane.f32.xlu0 %v989_v32 }
 0x62a   :  { %v988_v33 = vpop.xlane.xlu0 %987 }
 0x62b   :  { %v993_v34 = vmul.f32 0.03125, %v988_v33 }
 0x62d   :  { %v3671_v35 = vsub.f32 %v982_v28, %v993_v34  ;;  %v2706_v28 = vpack.c.bf16 %v1138_v27, %v1137_v26  ;;  %v2223_v26 = vld [vmem:[%s4001_s2 + $0x30] sm:$0xff]  ;;  %v2224_v27 = vld [vmem:[%s4001_s2 + $0x38] sm:$0xff] }
 0x62e   :  { %v991_v37 = vpop.xlane.xlu0 %990 }
 0x62f   :  { %v994_v38 = vmul.f32 0.03125, %v991_v37  ;;  %v997_v40 = vmul.f32 %v3671_v35, %v3671_v35  ;;  %2707 = vmatprep.subr.bf16.mxu0 %v2706_v28 }
 0x630   :  { %2709 = vmatpush3.bf16.msra.mxu0 %v2706_v28  ;;  %v2730_v28 = vpack.c.bf16 %v2224_v27, %v2223_v26  ;;  %v2248_v27 = vld [vmem:[%s3960_s18 + $0x80] sm:$0xff] }
 0x631   :  { %v3675_v41 = vsub.f32 %v983_v30, %v994_v38  ;;  %v999_v25 = vsel %vm449_vm3, %v997_v40, 0.0  ;;  %2554 = vmatprep.subr.msk.mxu0 %vm807_vm4, %v3645_v59  ;;  %v2204_v38 = vld [vmem:[#allocation22] ss:$0 sm:$0xff] }
 0x632   :  { %1000 = vadd.xlane.f32.xlu1 %v999_v25 }
 0x633   :  { %v998_v31 = vmul.f32 %v3675_v41, %v3675_v41 }
 0x635   :  { %v1002_v42 = vsel %vm449_vm3, %v998_v31, 0.0 }
 0x636   :  { %1003 = vadd.xlane.f32.xlu1 %v1002_v42 }
 0x6bf   :  { %v1001_v9 = vpop.xlane.xlu1 %1000 }
 0x6c0   :  { %v1005_v10 = vmul.f32 0.03125, %v1001_v9 }
 0x6c2   :  { %v1007_v11 = vadd.f32 1e-05, %v1005_v10  ;;  %v2205_v10 = vld [vmem:[%s3962_s20] ss:$0 sm:$0xff] }
 0x6c3   :  { %v1004_v12 = vpop.xlane.xlu1 %1003 }
 0x6c4   :  { %2816 = vrsqrt.f32 %v1007_v11  ;;  %v1006_v13 = vmul.f32 0.03125, %v1004_v12 }
 0x6c6   :  { %v1008_v14 = vadd.f32 1e-05, %v1006_v13 }
 0x6c8   :  { %2818 = vrsqrt.f32 %v1008_v14  ;;  %v2206_v14 = vld [vmem:[#allocation23] ss:$0 sm:$0xff] }
 0x6ce   :  { %v2817_v15 = vpop.eup %2816 }
 0x6cf   :  { %v1011_v17 = vmul.f32 %v2817_v15, %v3671_v35 }
 0x6d1   :  { %v1019_v19 = vmul.f32 %v2199_v16, %v1011_v17  ;;  %v2216_v17 = vld [vmem:[%s4003_s25 + $0x30] sm:$0xff] }
 0x6d2   :  { %v2819_v20 = vpop.eup %2818 }
 0x6d3   :  { %v1012_v21 = vmul.f32 %v2819_v20, %v3675_v41  ;;  %v1027_v22 = vadd.f32 %v2200_v18, %v1019_v19 }
 0x6d5   :  { %v1020_v23 = vmul.f32 %v2199_v16, %v1012_v21  ;;  %2472 = vmatprep.mubr.msk.f32.mxu1 %vm449_vm3, %v1027_v22 }
 0x6d7   :  { %v1028_v24 = vadd.f32 %v2200_v18, %v1020_v23  ;;  %v2217_v18 = vld [vmem:[%s4003_s25 + $0x38] sm:$0xff]  ;;  %v2222_v23 = vld [vmem:[%s4001_s2 + $0x28] sm:$0xff] }
 0x6d8   :  { %v2722_v21 = vpack.c.bf16 %v2217_v18, %v2216_v17 }
 0x6d9   :  { %2473 = vmatmul.mubr.msk.f32.vlgmr.msra.gmra.mrb[4].mxu1 %vm449_vm3, %v1028_v24 }
 0x6da   :  { %2713 = vmatpush3.bf16.msra.mxu1 %v2710_v57 }
 0x6db   :  { %2715 = vmatprep.subr.bf16.mxu1 %v2714_v61 }
 0x6de   :  { %2717 = vmatpush3.bf16.msra.mxu1 %v2714_v61 }
 0x6df   :  { %2719 = vmatprep.subr.bf16.mxu1 %v2718_v2 }
 0x7ac   :  { %v2474_v30 = vpop.f32.mrb[4].mxu1 }
 0x7ad   :  { %v1118_v32 = vadd.f32 %v2474_v30, %v2201_v29  ;;  %v1112_v33 = vpop.f32.mrb[5].mxu1 }
 0x7ae   :  { %v1113_v34 = vadd.f32 %v2201_v29, %v1112_v33 }
 0x7af   :  { %v1122_v37 = vmax.f32 %v1118_v32, 0.0  ;;  %v2218_v32 = vld [vmem:[#allocation13 + $0x1] ss:$0 sm:$0xff] }
 0x7b0   :  { %v1121_v35 = vmax.f32 %v1113_v34, 0.0  ;;  %v2211_v34 = vld [vmem:[#allocation11 + $0x1] ss:$0 sm:$0xff] }
 0x7b2   :  { %2507 = vmatprep.mubr.f32.mxu0 %v1121_v35 }
 0x7b3   :  { %2508 = vmatmul.mubr.f32.vlgmr.msra.gmra.mrb[12].mxu0 %v1122_v37 }
 0x7b4   :  { %2555 = vmatpush3.msk.msra.mxu0 %vm807_vm4, %v3645_v59 }
 0x7b5   :  { %2750 = vmatprep.subr.bf16.mxu0 %v3204_v0 }
 0x886   :  { %v2509_v40 = vpop.f32.mrb[12].mxu0 }
 0x887   :  { %v1218_v41 = vadd.f32 %v2509_v40, %v2204_v38  ;;  %v1212_v25 = vpop.f32.mrb[13].mxu0 }
 0x888   :  { %v1213_v31 = vadd.f32 %v2204_v38, %v1212_v25 }
 0x889   :  { %v1222_v42 = vadd.f32 %v1218_v41, %v1028_v24 }
 0x88a   :  { %v1221_v43 = vadd.f32 %v1213_v31, %v1027_v22  ;;  %v2221_v22 = vld [vmem:[%s4001_s2 + $0x20] sm:$0xff] }
 0x88b   :  { %v1228_v44 = vsel %vm449_vm3, %v1222_v42, 0.0  ;;  %v2726_v24 = vpack.c.bf16 %v2222_v23, %v2221_v22  ;;  %v2243_v22 = vld [vmem:[%s3958_s16 + $0x28] sm:$0xff] }
 0x88c   :  { %1229 = vadd.xlane.f32.xlu1 %v1228_v44  ;;  %v1225_v45 = vsel %vm449_vm3, %v1221_v43, 0.0 }
 0x88d   :  { %1226 = vadd.xlane.f32.xlu0 %v1225_v45 }
 0x919   :  { %v1230_v46 = vpop.xlane.xlu1 %1229 }
 0x91a   :  { %v1232_v47 = vmul.f32 0.03125, %v1230_v46  ;;  %v1227_v48 = vpop.xlane.xlu0 %1226 }
 0x91b   :  { %v1231_v49 = vmul.f32 0.03125, %v1227_v48  ;;  %v2234_v48 = vld [vmem:[%s3954_s12 + $0x28] sm:$0xff] }
 0x91c   :  { %v1234_v59 = vsub.f32 %v1222_v42, %v1232_v47  ;;  %v2233_v47 = vld [vmem:[%s3954_s12 + $0x20] sm:$0xff] }
 0x91d   :  { %v1233_v50 = vsub.f32 %v1221_v43, %v1231_v49  ;;  %v2225_v43 = vld [vmem:[#allocation14 + $0x1] ss:$0 sm:$0xff]  ;;  %v2742_v49 = vpack.c.bf16 %v2234_v48, %v2233_v47 }
 0x91e   :  { %v1236_v51 = vmul.f32 %v1234_v59, %v1234_v59 }
 0x91f   :  { %v1235_v52 = vmul.f32 %v1233_v50, %v1233_v50 }
 0x920   :  { %v1240_v53 = vsel %vm449_vm3, %v1236_v51, 0.0 }
 0x921   :  { %1241 = vadd.xlane.f32.xlu1 %v1240_v53  ;;  %v1237_v54 = vsel %vm449_vm3, %v1235_v52, 0.0 }
 0x922   :  { %1238 = vadd.xlane.f32.xlu0 %v1237_v54 }
 0x9ae   :  { %v1242_v3 = vpop.xlane.xlu1 %1241 }
 0x9af   :  { %v1244_v4 = vmul.f32 0.03125, %v1242_v3  ;;  %v1239_v5 = vpop.xlane.xlu0 %1238 }
 0x9b0   :  { %v1243_v6 = vmul.f32 0.03125, %v1239_v5 }
 0x9b1   :  { %v1246_v7 = vadd.f32 1e-05, %v1244_v4 }
 0x9b2   :  { %v1245_v8 = vadd.f32 1e-05, %v1243_v6 }
 0x9b3   :  { %2820 = vrsqrt.f32 %v1246_v7 }
 0x9b4   :  { %2822 = vrsqrt.f32 %v1245_v8 }
 0x9bd   :  { %v2821_v9 = vpop.eup %2820 }
 0x9be   :  { %v2823_v11 = vpop.eup %2822  ;;  %v1250_v12 = vmul.f32 %v2821_v9, %v1234_v59  ;;  %v2237_v9 = vld [vmem:[#allocation16 + $0x1] ss:$0 sm:$0xff] }
 0x9bf   :  { %v1249_v13 = vmul.f32 %v2823_v11, %v1233_v50 }
 0x9c0   :  { %v1258_v15 = vmul.f32 %v2205_v10, %v1250_v12 }
 0x9c1   :  { %v1257_v16 = vmul.f32 %v2205_v10, %v1249_v13 }
 0x9c2   :  { %v3781_v20 = vadd.f32 %v2206_v14, %v1258_v15 }
 0x9c3   :  { %v1265_v19 = vadd.f32 %v2206_v14, %v1257_v16 }
 0x9c5   :  { %2518 = vmatprep.mubr.msk.f32.mxu1 %vm449_vm3, %v1265_v19 }
 0x9c6   :  { %2519 = vmatmul.mubr.msk.f32.vlgmr.msra.gmra.mrb[6].mxu1 %vm449_vm3, %v3781_v20 }
 0x9c7   :  { %2721 = vmatpush3.bf16.msra.mxu1 %v2718_v2  ;;  %2529 = vmatprep.mubr.msk.f32.mxu1 %vm449_vm3, %v1265_v19  ;;  %v2746_v2 = vpack.c.bf16 %v2236_v63, %v2235_v62 }
 0x9c8   :  { %2723 = vmatprep.subr.bf16.mxu1 %v2722_v21 }
 0x9cb   :  { %2725 = vmatpush3.bf16.msra.mxu1 %v2722_v21  ;;  %v2242_v21 = vld [vmem:[%s3958_s16 + $0x20] sm:$0xff] }
 0x9cc   :  { %2727 = vmatprep.subr.bf16.mxu1 %v2726_v24  ;;  %v2751_v23 = vpack.c.bf16 %v2243_v22, %v2242_v21 }
 0x9ce   :  { %2530 = vmatmul.mubr.msk.f32.vlgmr.msra.gmra.mrb[8].mxu1 %vm449_vm3, %v3781_v20 }
 0x9cf   :  { %2729 = vmatpush3.bf16.msra.mxu1 %v2726_v24  ;;  %2540 = vmatprep.mubr.msk.f32.mxu1 %vm449_vm3, %v1265_v19  ;;  %v2245_v24 = vld [vmem:[%s3958_s16 + $0x38] sm:$0xff] }
 0x9d0   :  { %2731 = vmatprep.subr.bf16.mxu1 %v2730_v28 }
 0x9d3   :  { %2733 = vmatpush3.bf16.msra.mxu1 %v2730_v28  ;;  %v2249_v28 = vld [vmem:[%s3960_s18 + $0x88] sm:$0xff] }
 0x9d4   :  { %2735 = vmatprep.subr.bf16.mxu1 %v3626_v36 }
 0x9d6   :  { %2541 = vmatmul.mubr.msk.f32.vlgmr.msra.gmra.mrb[10].mxu1 %vm449_vm3, %v3781_v20 }
 0x9d7   :  { %2737 = vmatpush3.bf16.msra.mxu1 %v3626_v36 }
 0x9d8   :  { %2739 = vmatprep.subr.bf16.mxu1 %v3636_v39 }
 0x9db   :  { %2741 = vmatpush3.bf16.msra.mxu1 %v3636_v39 }
 0x9dc   :  { %2743 = vmatprep.subr.bf16.mxu1 %v2742_v49 }
 0xa99   :  { %v2520_v29 = vpop.f32.mrb[6].mxu1 }
 0xa9a   :  { %v1352_v30 = vpop.f32.mrb[7].mxu1  ;;  %v1358_v40 = vadd.f32 %v2520_v29, %v2211_v34  ;;  %v2250_v29 = vld [vmem:[%s3960_s18 + $0x90] sm:$0xff] }
 0xa9b   :  { %v1353_v41 = vadd.f32 %v2211_v34, %v1352_v30  ;;  %v2757_v30 = vpack.c.bf16 %v2249_v28, %v2248_v27  ;;  %v2252_v34 = vld [vmem:[%s3960_s18 + $0xa0] sm:$0xff] }
 0xa9c   :  { %v2071_v28 = vld [vmem:[%s3966_s24] sm:$0xff] }
 0xaa1   :  { %v2531_v33 = vpop.f32.mrb[8].mxu1 }
 0xaa2   :  { %v1446_v35 = vadd.f32 %v2531_v33, %v2218_v32  ;;  %v1440_v37 = vpop.f32.mrb[9].mxu1 }
 0xaa3   :  { %v1441_v38 = vadd.f32 %v2218_v32, %v1440_v37  ;;  %v2251_v32 = vld [vmem:[%s3960_s18 + $0x98] sm:$0xff] }
 0xaa4   :  { %v2760_v33 = vpack.c.bf16 %v2251_v32, %v2250_v29  ;;  %v2072_v29 = vld [vmem:[%s3966_s24 + $0x8] sm:$0xff]  ;;  %v2073_v32 = vld [vmem:[%s3966_s24 + $0x10] sm:$0xff] }
 0xaa5   :  { %v1537_v25 = vsub.f32 %v1441_v38, %v1446_v35  ;;  %v2253_v35 = vld [vmem:[%s3960_s18 + $0xa8] sm:$0xff]  ;;  %v2254_v38 = vld [vmem:[%s3960_s18 + $0xb0] sm:$0xff] }
 0xaa6   :  { %v2763_v37 = vpack.c.bf16 %v2253_v35, %v2252_v34 }
 0xaa7   :  { %v1539_v31 = vmul.f32 %v1537_v25, %v1353_v41  ;;  %v1540_v42 = vmul.f32 %v1537_v25, %v1358_v40  ;;  %v2255_v40 = vld [vmem:[%s3960_s18 + $0xb8] sm:$0xff]  ;;  %v2256_v25 = vld [vmem:[%s3960_s18 + $0xc0] sm:$0xff] }
 0xaa8   :  { %v2766_v41 = vpack.c.bf16 %v2255_v40, %v2254_v38 }
 0xaa9   :  { %v2542_v44 = vpop.f32.mrb[10].mxu1  ;;  %2551 = vmatprep.mubr.msk.f32.mxu1 %vm449_vm3, %v1539_v31  ;;  %v2257_v31 = vld [vmem:[%s3960_s18 + $0xc8] sm:$0xff] }
 0xaaa   :  { %v1534_v36 = vadd.f32 %v2542_v44, %v2225_v43  ;;  %v1528_v45 = vpop.f32.mrb[11].mxu1  ;;  %2552 = vmatmul.mubr.msk.f32.vlgmr.msra.gmra.mrb[12].mxu1 %vm449_vm3, %v1540_v42  ;;  %v2769_v42 = vpack.c.bf16 %v2257_v31, %v2256_v25  ;;  %v2259_v44 = vld [vmem:[%s3960_s18 + $0xd8] sm:$0xff] }
 0xaab   :  { %v1529_v39 = vadd.f32 %v2225_v43, %v1528_v45  ;;  %2745 = vmatpush3.bf16.msra.mxu1 %v2742_v49  ;;  %v2258_v43 = vld [vmem:[%s3960_s18 + $0xd0] sm:$0xff]  ;;  %v2260_v45 = vld [vmem:[%s3960_s18 + $0xe0] sm:$0xff] }
 0xaac   :  { %2747 = vmatprep.subr.bf16.mxu1 %v2746_v2 }
 0xaad   :  { %v1538_v46 = vsub.f32 %v1529_v39, %v1534_v36  ;;  %v2261_v39 = vld [vmem:[%s3960_s18 + $0xe8] sm:$0xff] }
 0xaaf   :  { %2749 = vmatpush3.bf16.msra.mxu1 %v2746_v2  ;;  %v2264_v2 = vld [vmem:[#allocation22 + $0x1] ss:$0 sm:$0xff] }
 0xab0   :  { %2756 = vmatprep.subr.bf16.mxu1 %v3204_v0 }
 0xb7d   :  { %v2553_v59 = vpop.f32.mrb[12].mxu1 }
 0xb7e   :  { %v1623_v50 = vsub.f32 0.0, %v2553_v59  ;;  %v1613_v51 = vpop.f32.mrb[13].mxu1 }
 0xb7f   :  { %v1622_v52 = vsub.f32 0.0, %v1613_v51 }
 0xb80   :  { %v1626_v53 = vmul.f32 1.442695, %v1623_v50  ;;  %v2240_v50 = vld [vmem:[#allocation17 + $0x1] ss:$0 sm:$0xff] }
 0xb81   :  { %v1624_v54 = vmul.f32 1.442695, %v1622_v52  ;;  %v2241_v52 = vld [vmem:[#allocation19 + $0x1] ss:$0 sm:$0xff] }
 0xb82   :  { %2824 = vpow2.f32 %v1626_v53 }
 0xb83   :  { %2826 = vpow2.f32 %v1624_v54 }
 0xb8c   :  { %v2825_v55 = vpop.eup %2824 }
 0xb8d   :  { %v2827_v56 = vpop.eup %2826  ;;  %v1629_v57 = vadd.f32 1.0, %v2825_v55  ;;  %v2262_v55 = vld [vmem:[%s3960_s18 + $0xf0] sm:$0xff] }
 0xb8e   :  { %v1628_v58 = vadd.f32 1.0, %v2827_v56  ;;  %v2263_v56 = vld [vmem:[%s3960_s18 + $0xf8] sm:$0xff] }
 0xb90   :  { %2828 = vrcp.f32 %v1628_v58  ;;  %v2246_v58 = vld [vmem:[#allocation20 + $0x1] ss:$0 sm:$0xff] }
 0xb91   :  { %2830 = vrcp.f32 %v1629_v57  ;;  %v2778_v57 = vpack.c.bf16 %v2263_v56, %v2262_v55 }
 0xb9a   :  { %v2829_v60 = vpop.eup %2828 }
 0xb9b   :  { %v2831_v61 = vpop.eup %2830  ;;  %2556 = vmatprep.mubr.msk.f32.mxu0 %vm800_vm5, %v2829_v60 }
 0xb9c   :  { %2557 = vmatmul.mubr.msk.f32.vlgmr.msra.gmra.mrb[14].mxu0 %vm800_vm5, %v2831_v61 }
 0xb9d   :  { %2578 = vmatprep.mubr.msk.f32.mxu0 %vm3205_vm0, %v3206_v1  ;;  %2752 = vmatpush3.bf16.msra.mxu0 %v2751_v23 }
 0xb9e   :  { %2753 = vmatprep.subr.bf16.mxu0 %v3204_v0 }
 0xc6f   :  { %v2558_v3 = vpop.f32.mrb[14].mxu0 }
 0xc70   :  { %v1717_v4 = vmul.f32 %v2558_v3, %v1538_v46  ;;  %v1706_v5 = vpop.f32.mrb[15].mxu0 }
 0xc71   :  { %v1715_v6 = vmul.f32 %v1706_v5, %v1538_v46  ;;  %v2775_v46 = vpack.c.bf16 %v2261_v39, %v2260_v45 }
 0xc72   :  { %v1718_v7 = vadd.f32 %v1717_v4, %v1534_v36 }
 0xc73   :  { %v1716_v8 = vadd.f32 %v1715_v6, %v1534_v36  ;;  %v2772_v36 = vpack.c.bf16 %v2259_v44, %v2258_v43 }
 0xc75   :  { %2567 = vmatprep.mubr.msk.f32.mxu1 %vm449_vm3, %v1716_v8 }
 0xc76   :  { %2568 = vmatmul.mubr.msk.f32.vlgmr.msra.gmra.mrb[14].mxu1 %vm449_vm3, %v1718_v7 }
 0xc77   :  { %2613 = vmatprep.mubr.msk.f32.mxu1 %vm3205_vm0, %v3206_v1  ;;  %2758 = vmatpush3.bf16.msra.mxu1 %v2757_v30  ;;  %v2781_v30 = vpack.c.bf16 %v2072_v29, %v2071_v28 }
 0xc78   :  { %2759 = vmatprep.subr.bf16.mxu1 %v3204_v0 }
 0xc7b   :  { %2761 = vmatpush3.bf16.msra.mxu1 %v2760_v33  ;;  %v2074_v33 = vld [vmem:[%s3966_s24 + $0x18] sm:$0xff]  ;;  %s3146_s24 = scalar_lea.vmem %s2163_s19, 128 }
 0xc7c   :  { %2762 = vmatprep.subr.bf16.mxu1 %v3204_v0  ;;  %v2784_v34 = vpack.c.bf16 %v2074_v33, %v2073_v32  ;;  %p3147_p0 = scmp.ne.s32.totalorder %s2163_s19, %s3146_s24  ;;  %p3152_p2 = scmp.lt.s32.totalorder %s3146_s24, %s3146_s24 }
 0xc7e   :  { %p3153_p3 = por %p3152_p2, %p3151_p1 }
 0xc7f   :  { %2764 = vmatpush3.bf16.msra.mxu1 %v2763_v37 }
 0xc80   :  { %2765 = vmatprep.subr.bf16.mxu1 %v3204_v0  ;;  %p3154_p4 = pnand %p3153_p3, %p3147_p0 }
 0xc83   :  { %2767 = vmatpush3.bf16.msra.mxu1 %v2766_v41 }
 0xc84   :  { %2768 = vmatprep.subr.bf16.mxu1 %v3204_v0 }
 0xc87   :  { %2770 = vmatpush3.bf16.msra.mxu1 %v2769_v42 }
 0xc88   :  { %2771 = vmatprep.subr.bf16.mxu1 %v3204_v0 }
 0xc8b   :  { %2773 = vmatpush3.bf16.msra.mxu1 %v2772_v36 }
 0xc8c   :  { %2774 = vmatprep.subr.bf16.mxu1 %v3204_v0 }
 0xc8f   :  { %2776 = vmatpush3.bf16.msra.mxu1 %v2775_v46 }
 0xc90   :  { %2777 = vmatprep.subr.bf16.mxu1 %v3204_v0 }
 0xc93   :  { %2779 = vmatpush3.bf16.msra.mxu1 %v2778_v57 }
 0xd49   :  { %v2569_v10 = vpop.f32.mrb[14].mxu1 }
 0xd4a   :  { %v1809_v11 = vadd.f32 %v2569_v10, %v2237_v9  ;;  %v1804_v12 = vpop.f32.mrb[15].mxu1 }
 0xd4c   :  { %v1812_v13 = vadd.f32 %v1809_v11, %v3781_v20  ;;  %v2244_v20 = vld [vmem:[%s3958_s16 + $0x30] sm:$0xff] }
 0xd4d   :  { %v2754_v26 = vpack.c.bf16 %v2245_v24, %v2244_v20 }
 0xd4e   :  { %v1817_v14 = vsel %vm449_vm3, %v1812_v13, 0.0 }
 0xd4f   :  { %1818 = vadd.xlane.f32.xlu0 %v1817_v14  ;;  %2755 = vmatpush3.bf16.msra.mxu0 %v2754_v26 }
 0xd50   :  { %2780 = vmatprep.subr.bf16.mxu0 %v3204_v0 }
 0xddc   :  { %v1819_v15 = vpop.xlane.xlu0 %1818 }
 0xddd   :  { %v1820_v16 = vmul.f32 0.03125, %v1819_v15 }
 0xddf   :  { %v1821_v17 = vsub.f32 %v1812_v13, %v1820_v16  ;;  %v2266_v16 = vld [vmem:[%s3962_s20 + $0x1] ss:$0 sm:$0xff] }
 0xde1   :  { %v1822_v18 = vmul.f32 %v1821_v17, %v1821_v17 }
 0xde3   :  { %v1823_v19 = vsel %vm449_vm3, %v1822_v18, 0.0  ;;  %v2267_v18 = vld [vmem:[#allocation23 + $0x1] ss:$0 sm:$0xff] }
 0xde4   :  { %1824 = vadd.xlane.f32.xlu1 %v1823_v19 }
 0xe71   :  { %v1825_v47 = vpop.xlane.xlu1 %1824 }
 0xe72   :  { %v1826_v48 = vmul.f32 0.03125, %v1825_v47 }
 0xe74   :  { %v1827_v49 = vadd.f32 1e-05, %v1826_v48 }
 0xe76   :  { %2832 = vrsqrt.f32 %v1827_v49 }
 0xe80   :  { %v2833_v59 = vpop.eup %2832 }
 0xe81   :  { %v1829_v51 = vmul.f32 %v2833_v59, %v1821_v17 }
 0xe83   :  { %v1836_v53 = vmul.f32 %v2240_v50, %v1829_v51 }
 0xe85   :  { %v1843_v54 = vadd.f32 %v2241_v52, %v1836_v53 }
 0xe87   :  { %2579 = vmatmul.mubr.msk.f32.vlgmr.msra.gmra.mrb[16].mxu0 %vm449_vm3, %v1843_v54 }
 0xe88   :  { %2624 = vmatprep.mubr.msk.f32.mxu0 %vm3205_vm0, %v3206_v1  ;;  %2782 = vmatpush3.bf16.msra.mxu0 %v2781_v30 }
 0xe89   :  { %2783 = vmatprep.subr.bf16.mxu0 %v3204_v0  ;;  %v2268_v0 = vld [vmem:[%s4004_s23] ss:$0 sm:$0xff] }
 0xe8c   :  { %2785 = vmatpush3.bf16.msra.mxu0 %v2784_v34 }
 0xf5a   :  { %v1926_v60 = vpop.f32.mrb[16].mxu0 }
 0xf5b   :  { %v1927_v61 = vadd.f32 %v2246_v58, %v1926_v60  ;;  %v2580_v62 = vpop.f32.mrb[17].mxu0 }
 0xf5d   :  { %v1930_v63 = vmax.f32 %v1927_v61, 0.0 }
 0xf5f   :  { %2614 = vmatmul.mubr.f32.vlgmr.msra.gmra.mrb[16].mxu1 %v1930_v63 }
0x1032   :  { %v2022_v3 = vpop.f32.mrb[16].mxu1 }
0x1033   :  { %v2023_v4 = vadd.f32 %v2264_v2, %v2022_v3  ;;  %v2615_v1 = vpop.f32.mrb[17].mxu1 }
0x1035   :  { %v2026_v5 = vadd.f32 %v2023_v4, %v1843_v54 }
0x1037   :  { %v2031_v6 = vsel %vm449_vm3, %v2026_v5, 0.0 }
0x1038   :  { %2032 = vadd.xlane.f32.xlu0 %v2031_v6 }
0x10c5   :  { %v2033_v7 = vpop.xlane.xlu0 %2032 }
0x10c6   :  { %v2034_v8 = vmul.f32 0.03125, %v2033_v7 }
0x10c8   :  { %v2035_v9 = vsub.f32 %v2026_v5, %v2034_v8 }
0x10ca   :  { %v2036_v10 = vmul.f32 %v2035_v9, %v2035_v9 }
0x10cc   :  { %v2037_v11 = vsel %vm449_vm3, %v2036_v10, 0.0 }
0x10cd   :  { %2038 = vadd.xlane.f32.xlu1 %v2037_v11 }
0x115a   :  { %v2039_v12 = vpop.xlane.xlu1 %2038 }
0x115b   :  { %v2040_v13 = vmul.f32 0.03125, %v2039_v12 }
0x115d   :  { %v2041_v14 = vadd.f32 1e-05, %v2040_v13 }
0x115f   :  { %2834 = vrsqrt.f32 %v2041_v14 }
0x1169   :  { %v2835_v15 = vpop.eup %2834 }
0x116a   :  { %v2043_v17 = vmul.f32 %v2835_v15, %v2035_v9 }
0x116c   :  { %v2050_v19 = vmul.f32 %v2266_v16, %v2043_v17 }
0x116e   :  { %v2057_v21 = vadd.f32 %v2267_v18, %v2050_v19 }
0x1170   :  { %v2058_v22 = vsel %vm449_vm3, %v2057_v21, 0.0 }
0x1171   :  { %2059 = vadd.xlane.f32.xlu0 %v2058_v22 }
0x11fe   :  { %v2060_v23 = vpop.xlane.xlu0 %2059 }
0x11ff   :  { %v2061_v20 = vmul.f32 0.03125, %v2060_v23 }
0x1201   :  { %v2062_v24 = vsub.f32 %v2057_v21, %v2061_v20 }
0x1203   :  { %v2063_v26 = vmul.f32 %v2062_v24, %v2062_v24 }
0x1205   :  { %v2064_v27 = vsel %vm449_vm3, %v2063_v26, 0.0 }
0x1206   :  { %2065 = vadd.xlane.f32.xlu1 %v2064_v27 }
0x1293   :  { %v2066_v35 = vpop.xlane.xlu1 %2065 }
0x1294   :  { %v2067_v37 = vmul.f32 0.03125, %v2066_v35 }
0x1296   :  { %v2068_v38 = vadd.f32 1e-05, %v2067_v37 }
0x1298   :  { %2836 = vrsqrt.f32 %v2068_v38 }
0x12a2   :  { %v2837_v40 = vpop.eup %2836 }
0x12a3   :  { %v2070_v41 = vmul.f32 %v2837_v40, %v2062_v24 }
0x12a5   :  { %2625 = vmatmul.mubr.msk.f32.vlgmr.msra.gmra.mrb[18].mxu0 %vm449_vm3, %v2070_v41 }
0x1378   :  { %v2151_v25 = vpop.f32.mrb[18].mxu0 }
0x1379   :  { %v2152_v31 = vadd.f32 %v2268_v0, %v2151_v25  ;;  %v2626_v42 = vpop.f32.mrb[19].mxu0 }
0x137b   :  { %2155 = vst [vmem:[#allocation25] sm:$0xff] %v2152_v31 }
0x137c   :  { %3157 = shalt.err (!%p3154_p4)
}
0x137d   :  { %s4005_s30 = sld [smem:[#allocation47_spill]] }
0x1383   :  { %s3158_s12 = scalar_lea.hbm %s4005_s30, 128 }
0x1384   :  { %p3159_p5 = scmp.ne.s32.totalorder %s4005_s30, %s3158_s12  ;;  %p3162_p6 = scmp.lt.u32.totalorder %s3158_s12, %s4005_s30 }
0x1386   :  { %p3164_p7 = pnand %p3162_p6, %p3159_p5 }
0x1388   :  { %3167 = shalt.err (!%p3164_p7)
}
0x1389   :  { %2165 = dma.vmem_to_hbm [thread:$0]  %s2163_s19, 128, %s4005_s30, [#allocation4]  }
0x138a   :  { %3184 = dma.done.wait [#allocation4], 128  }
0x138b   :  { %3185 = vsyncadd [#allocation4], 4294967168 }
0x138c   :  { %2169 = vsyncpa [#allocation3], 1 }
0x138d   :  { %2170 = vsyncpa [#allocation6], 1 }
0x138e   :  { %2171 = vsyncpa [#allocation9], 1 }
0x138f   :  { %2172 = vsyncpa [#allocation12], 1 }
0x1390   :  { %2173 = vsyncpa [#allocation15], 1 }
0x1391   :  { %2174 = vsyncpa [#allocation18], 1 }
0x1392   :  { %2175 = vsyncpa [#allocation21], 1 }
0x1393   :  { %2176 = vsyncpa [#allocation24], 1 }
0x1394   :  { %2177 = vsyncpa [#allocation4], 1 }

</bundles_post_ra>
